<compile_context>
chip_gen: v7x
topology: tpu7x:2x2x1
jax: 0.10.0
libtpu: 0.0.40
codegen_flags: <defaults>
</compile_context>

<pallas_src>
import functools

import jax
import jax.numpy as jnp
from jax import lax
from jax.experimental import pallas as pl
from jax.experimental.pallas import tpu as pltpu  # noqa: F401  (TPU backend)


def attn_kernel(x_ref, wqkv_ref, bqkv_ref, rnd_ref, o_ref, *, scale, drop_p):
    # o_ref: (B, S, DI); x_ref: (B*S, D); wqkv_ref: (D, 3*DI); rnd_ref: (B, S, S)
    B, S, DI = o_ref.shape

    # Fused Q/K/V projection over the flattened (B*S, D) activations:
    # a single 3*DI-wide matmul (one MXU push/pop sequence, one bias add)
    # instead of three DI-wide ones.
    qkv = jnp.dot(x_ref[...], wqkv_ref[...],
                  preferred_element_type=jnp.float32) + bqkv_ref[...]

    if drop_p > 0.0:
        # Integer-space dropout threshold: keep iff uniform u32 >= drop_p*2^32.
        thr = jnp.uint32(min(int(round(drop_p * (1 << 32))), (1 << 32) - 1))
        inv_keep = jnp.float32(1.0 / (1.0 - drop_p))

    # B is tiny (2): static unroll over the per-batch (S, S) attention blocks.
    for b in range(B):
        rows = slice(b * S, (b + 1) * S)
        # lane slices within one 128-lane group: cheap.
        q = qkv[rows, 0:DI]
        k = qkv[rows, DI:2 * DI]
        v = qkv[rows, 2 * DI:3 * DI]

        # q @ k^T without materializing a transpose of k: contract last dims.
        qk = lax.dot_general(
            q, k,
            dimension_numbers=(((1,), (1,)), ((), ())),
            preferred_element_type=jnp.float32,
        ) * jnp.float32(scale)

        # softmax over last dim; divide once on the reduced (S, 1) sums and
        # broadcast a multiply over the (S, S) tile (cheaper than a broadcast
        # divide).
        m = jnp.max(qk, axis=-1, keepdims=True)
        e = jnp.exp(qk - m)
        inv = jnp.float32(1.0) / jnp.sum(e, axis=-1, keepdims=True)
        attn = e * inv

        # dropout (training semantics, like torch.nn.functional.dropout default).
        # Random bits come from the wrapper (portable: works compiled on TPU and
        # in interpret mode — no in-kernel TPU PRNG primitives).
        if drop_p > 0.0:
            keep = rnd_ref[b] >= thr
            attn = jnp.where(keep, attn * inv_keep, jnp.float32(0.0))

        # attention-weighted values: (S, S) @ (S, DI) -> (S, DI)
        o_ref[b] = jnp.dot(attn, v, preferred_element_type=jnp.float32)


def attention_forward(x, wqkv, bqkv, dropout_key, *, d_head, drop_p):
    B, S, D = x.shape
    DI = wqkv.shape[1] // 3
    scale = float(d_head) ** (-0.5)

    # Dropout mask bits drawn host-side with jax.random (statistically
    # equivalent to torch's mask, not bit-identical).
    rnd = jax.random.bits(dropout_key, (B, S, S), dtype=jnp.uint32)

    # Flatten activations so the QKV projection uses all B*S rows at once.
    x_flat = x.reshape(B * S, D)

    # Whole problem is < 1 MiB of VMEM on any TPU generation, so run it as a
    # single un-gridded invocation: whole arrays resident in VMEM, no per-step
    # pipeline overhead, full-size MXU tiles.
    kernel = functools.partial(attn_kernel, scale=scale, drop_p=drop_p)
    return pl.pallas_call(
        kernel,
        out_shape=jax.ShapeDtypeStruct((B, S, DI), jnp.float32),
    )(x_flat, wqkv, bqkv, rnd)


if __name__ == "__main__":
    # Small shapes consistent with the module's forward:
    # x: (B, S, d_model); Linear(d_model -> n_head * d_head).
    B, S = 2, 128
    d_model, n_head, d_head = 32, 4, 8
    d_inner = n_head * d_head
    drop_ratio = 0.1

    key = jax.random.PRNGKey(0)
    kx, kq, kk, kv, kbq, kbk, kbv, kdrop = jax.random.split(key, 8)

    x = jax.random.normal(kx, (B, S, d_model), dtype=jnp.float32)

    # Deterministic PyTorch-style Linear init: U(-1/sqrt(in), 1/sqrt(in)).
    bound = 1.0 / (d_model ** 0.5)
    wq = jax.random.uniform(kq, (d_model, d_inner), jnp.float32, -bound, bound)
    wk = jax.random.uniform(kk, (d_model, d_inner), jnp.float32, -bound, bound)
    wv = jax.random.uniform(kv, (d_model, d_inner), jnp.float32, -bound, bound)
    bq = jax.random.uniform(kbq, (1, d_inner), jnp.float32, -bound, bound)
    bk = jax.random.uniform(kbk, (1, d_inner), jnp.float32, -bound, bound)
    bv = jax.random.uniform(kbv, (1, d_inner), jnp.float32, -bound, bound)

    # Fuse the three projections into one weight / bias; kernel slices q/k/v.
    wqkv = jnp.concatenate([wq, wk, wv], axis=1)   # (d_model, 3*d_inner)
    bqkv = jnp.concatenate([bq, bk, bv], axis=1)   # (1, 3*d_inner)

    out = attention_forward(x, wqkv, bqkv, kdrop,
                            d_head=d_head, drop_p=drop_ratio)
    jax.block_until_ready(out)
    assert out.shape == (B, S, d_inner), out.shape
    assert bool(jnp.isfinite(out).all())
    print("KERNEL_OK")
</pallas_src>

<mosaic_0001>
module attributes {stable_mosaic.version = 11 : i64} {
  func.func @attn_kernel(%arg0: memref<256x32xf32, #tpu.memory_space<vmem>>, %arg1: memref<32x96xf32, #tpu.memory_space<vmem>>, %arg2: memref<1x96xf32, #tpu.memory_space<vmem>>, %arg3: memref<2x128x128xi32, #tpu.memory_space<vmem>>, %arg4: memref<2x128x32xf32, #tpu.memory_space<vmem>>) attributes {dimension_semantics = [], scalar_prefetch = 0 : i64, scratch_operands = 0 : i64, tpu.core_type = #tpu.core_type<tc>} {
    %c0 = arith.constant 0 : index
    %c0_0 = arith.constant 0 : index
    %0 = vector.load %arg0[%c0, %c0_0] : memref<256x32xf32, #tpu.memory_space<vmem>>, vector<256x32xf32>
    %c0_1 = arith.constant 0 : index
    %c0_2 = arith.constant 0 : index
    %1 = vector.load %arg1[%c0_1, %c0_2] : memref<32x96xf32, #tpu.memory_space<vmem>>, vector<32x96xf32>
    %cst = arith.constant dense<0.000000e+00> : vector<256x96xf32>
    %2 = tpu.matmul %0, %1, %cst {dimension_numbers = #tpu.dot_dimension_numbers<[1], [0], [0], [1], [0, 0, 1, 1], [], []>} : vector<256x32xf32>, vector<32x96xf32>, vector<256x96xf32> -> vector<256x96xf32>
    %c0_3 = arith.constant 0 : index
    %c0_4 = arith.constant 0 : index
    %3 = vector.load %arg2[%c0_3, %c0_4] : memref<1x96xf32, #tpu.memory_space<vmem>>, vector<1x96xf32>
    %4 = vector.broadcast %3 : vector<1x96xf32> to vector<256x96xf32>
    %5 = arith.addf %2, %4 : vector<256x96xf32>
    %6 = vector.extract_strided_slice %5 {offsets = [0, 0], sizes = [128, 32], strides = [1, 1]} : vector<256x96xf32> to vector<128x32xf32>
    %7 = vector.extract_strided_slice %5 {offsets = [0, 32], sizes = [128, 32], strides = [1, 1]} : vector<256x96xf32> to vector<128x32xf32>
    %8 = vector.extract_strided_slice %5 {offsets = [0, 64], sizes = [128, 32], strides = [1, 1]} : vector<256x96xf32> to vector<128x32xf32>
    %cst_5 = arith.constant dense<0.000000e+00> : vector<128x128xf32>
    %9 = tpu.matmul %6, %7, %cst_5 {dimension_numbers = #tpu.dot_dimension_numbers<[1], [1], [0], [0], [0, 0, 1, 0], [], []>} : vector<128x32xf32>, vector<128x32xf32>, vector<128x128xf32> -> vector<128x128xf32>
    %cst_6 = arith.constant 0.353553385 : f32
    %10 = vector.broadcast %cst_6 : f32 to vector<128x128xf32>
    %11 = arith.mulf %9, %10 : vector<128x128xf32>
    %cst_7 = arith.constant dense<0xFF800000> : vector<128xf32>
    %12 = vector.multi_reduction <maximumf>, %11, %cst_7 [1] : vector<128x128xf32> to vector<128xf32>
    %13 = vector.shape_cast %12 : vector<128xf32> to vector<128x1xf32>
    %14 = vector.broadcast %13 : vector<128x1xf32> to vector<128x128xf32>
    %15 = arith.subf %11, %14 : vector<128x128xf32>
    %16 = math.exp %15 : vector<128x128xf32>
    %cst_8 = arith.constant dense<0.000000e+00> : vector<128xf32>
    %17 = vector.multi_reduction <add>, %16, %cst_8 [1] : vector<128x128xf32> to vector<128xf32>
    %18 = vector.shape_cast %17 : vector<128xf32> to vector<128x1xf32>
    %cst_9 = arith.constant 1.000000e+00 : f32
    %19 = vector.broadcast %cst_9 : f32 to vector<128x1xf32>
    %20 = arith.divf %19, %18 : vector<128x1xf32>
    %21 = vector.broadcast %20 : vector<128x1xf32> to vector<128x128xf32>
    %22 = arith.mulf %16, %21 : vector<128x128xf32>
    %c0_10 = arith.constant 0 : index
    %c0_11 = arith.constant 0 : index
    %c0_12 = arith.constant 0 : index
    %23 = vector.load %arg3[%c0_10, %c0_11, %c0_12] : memref<2x128x128xi32, #tpu.memory_space<vmem>>, vector<1x128x128xi32>
    %24 = vector.shape_cast %23 : vector<1x128x128xi32> to vector<128x128xi32>
    %c429496730_i32 = arith.constant 429496730 : i32
    %25 = vector.broadcast %c429496730_i32 : i32 to vector<128x128xi32>
    %26 = arith.cmpi uge, %24, %25 : vector<128x128xi32>
    %cst_13 = arith.constant 1.11111116 : f32
    %27 = vector.broadcast %cst_13 : f32 to vector<128x128xf32>
    %28 = arith.mulf %22, %27 : vector<128x128xf32>
    %cst_14 = arith.constant 0.000000e+00 : f32
    %29 = vector.broadcast %cst_14 : f32 to vector<128x128xf32>
    %30 = arith.select %26, %28, %29 : vector<128x128xi1>, vector<128x128xf32>
    %cst_15 = arith.constant dense<0.000000e+00> : vector<128x32xf32>
    %31 = tpu.matmul %30, %8, %cst_15 {dimension_numbers = #tpu.dot_dimension_numbers<[1], [0], [0], [1], [0, 0, 1, 1], [], []>} : vector<128x128xf32>, vector<128x32xf32>, vector<128x32xf32> -> vector<128x32xf32>
    %c0_16 = arith.constant 0 : index
    %c0_17 = arith.constant 0 : index
    %c0_18 = arith.constant 0 : index
    %32 = vector.load %arg4[%c0_16, %c0_17, %c0_18] : memref<2x128x32xf32, #tpu.memory_space<vmem>>, vector<1x128x32xf32>
    %33 = vector.shape_cast %32 : vector<1x128x32xf32> to vector<128x32xf32>
    %34 = vector.shape_cast %31 : vector<128x32xf32> to vector<1x128x32xf32>
    tpu.vector_store %arg4[%c0_16, %c0_17, %c0_18], %34 {strides = array<i32>} : memref<2x128x32xf32, #tpu.memory_space<vmem>>, vector<1x128x32xf32>,
    %35 = vector.extract_strided_slice %5 {offsets = [128, 0], sizes = [128, 32], strides = [1, 1]} : vector<256x96xf32> to vector<128x32xf32>
    %36 = vector.extract_strided_slice %5 {offsets = [128, 32], sizes = [128, 32], strides = [1, 1]} : vector<256x96xf32> to vector<128x32xf32>
    %37 = vector.extract_strided_slice %5 {offsets = [128, 64], sizes = [128, 32], strides = [1, 1]} : vector<256x96xf32> to vector<128x32xf32>
    %cst_19 = arith.constant dense<0.000000e+00> : vector<128x128xf32>
    %38 = tpu.matmul %35, %36, %cst_19 {dimension_numbers = #tpu.dot_dimension_numbers<[1], [1], [0], [0], [0, 0, 1, 0], [], []>} : vector<128x32xf32>, vector<128x32xf32>, vector<128x128xf32> -> vector<128x128xf32>
    %cst_20 = arith.constant 0.353553385 : f32
    %39 = vector.broadcast %cst_20 : f32 to vector<128x128xf32>
    %40 = arith.mulf %38, %39 : vector<128x128xf32>
    %cst_21 = arith.constant dense<0xFF800000> : vector<128xf32>
    %41 = vector.multi_reduction <maximumf>, %40, %cst_21 [1] : vector<128x128xf32> to vector<128xf32>
    %42 = vector.shape_cast %41 : vector<128xf32> to vector<128x1xf32>
    %43 = vector.broadcast %42 : vector<128x1xf32> to vector<128x128xf32>
    %44 = arith.subf %40, %43 : vector<128x128xf32>
    %45 = math.exp %44 : vector<128x128xf32>
    %cst_22 = arith.constant dense<0.000000e+00> : vector<128xf32>
    %46 = vector.multi_reduction <add>, %45, %cst_22 [1] : vector<128x128xf32> to vector<128xf32>
    %47 = vector.shape_cast %46 : vector<128xf32> to vector<128x1xf32>
    %cst_23 = arith.constant 1.000000e+00 : f32
    %48 = vector.broadcast %cst_23 : f32 to vector<128x1xf32>
    %49 = arith.divf %48, %47 : vector<128x1xf32>
    %50 = vector.broadcast %49 : vector<128x1xf32> to vector<128x128xf32>
    %51 = arith.mulf %45, %50 : vector<128x128xf32>
    %c1 = arith.constant 1 : index
    %c0_24 = arith.constant 0 : index
    %c0_25 = arith.constant 0 : index
    %52 = vector.load %arg3[%c1, %c0_24, %c0_25] : memref<2x128x128xi32, #tpu.memory_space<vmem>>, vector<1x128x128xi32>
    %53 = vector.shape_cast %52 : vector<1x128x128xi32> to vector<128x128xi32>
    %c429496730_i32_26 = arith.constant 429496730 : i32
    %54 = vector.broadcast %c429496730_i32_26 : i32 to vector<128x128xi32>
    %55 = arith.cmpi uge, %53, %54 : vector<128x128xi32>
    %cst_27 = arith.constant 1.11111116 : f32
    %56 = vector.broadcast %cst_27 : f32 to vector<128x128xf32>
    %57 = arith.mulf %51, %56 : vector<128x128xf32>
    %cst_28 = arith.constant 0.000000e+00 : f32
    %58 = vector.broadcast %cst_28 : f32 to vector<128x128xf32>
    %59 = arith.select %55, %57, %58 : vector<128x128xi1>, vector<128x128xf32>
    %cst_29 = arith.constant dense<0.000000e+00> : vector<128x32xf32>
    %60 = tpu.matmul %59, %37, %cst_29 {dimension_numbers = #tpu.dot_dimension_numbers<[1], [0], [0], [1], [0, 0, 1, 1], [], []>} : vector<128x128xf32>, vector<128x32xf32>, vector<128x32xf32> -> vector<128x32xf32>
    %c1_30 = arith.constant 1 : index
    %c0_31 = arith.constant 0 : index
    %c0_32 = arith.constant 0 : index
    %61 = vector.load %arg4[%c1_30, %c0_31, %c0_32] : memref<2x128x32xf32, #tpu.memory_space<vmem>>, vector<1x128x32xf32>
    %62 = vector.shape_cast %61 : vector<1x128x32xf32> to vector<128x32xf32>
    %63 = vector.shape_cast %60 : vector<128x32xf32> to vector<1x128x32xf32>
    tpu.vector_store %arg4[%c1_30, %c0_31, %c0_32], %63 {strides = array<i32>} : memref<2x128x32xf32, #tpu.memory_space<vmem>>, vector<1x128x32xf32>,
    return
  }
}

</mosaic_0001>

<bundles_post_ra>
// kernel: tpu_custom_call.1
= control target key start
LH: loop header
LB: loop body
LE: loop exit
PB: predicated region body
PF: predicated region fallthrough
CT: control target
= control target key end

     0   :  { %vm60_vm0 = vcmask 261120   ;;  %s3893_s1 = inlined_call_operand.vmem [shape: f32[32,96], index: 1, kind: input, shape index: {}]   ;;  %s3894_s0 = inlined_call_operand.vmem [shape: f32[256,32], index: 0, kind: input, shape index: {}]   ;;  %s3895_s2 = inlined_call_operand.vmem [shape: f32[1,96], index: 2, kind: input, shape index: {}]   ;;  %s3896_s3 = inlined_call_operand.vmem [shape: u32[2,128,128], index: 3, kind: input, shape index: {}]   ;;  %s3897_s4 = inlined_call_operand.vmem [shape: f32[2,128,32], index: 4, kind: output, shape index: {}]  }
   0x1   :  { %v49_v0 = vld [vmem:[%s3893_s1] sm:$0xff]  ;;  %v50_v1 = vld [vmem:[%s3893_s1 + $0x8] sm:$0xff]  ;;  %v51_v2 = vld [vmem:[%s3893_s1 + $0x10] sm:$0xff] }
   0x2   :  { %v2405_v3 = vpack.c.bf16 %v50_v1, %v49_v0  ;;  %v52_v4 = vld [vmem:[%s3893_s1 + $0x18] sm:$0xff]  ;;  %v17_v5 = vld [vmem:[%s3894_s0] sm:$0xff]  ;;  %v18_v7 = vld [vmem:[%s3894_s0 + $0x8] sm:$0xff] }
   0x3   :  { %v2409_v6 = vpack.c.bf16 %v52_v4, %v51_v2  ;;  %2133 = vmatprep.mubr.msk.f32.mxu0 %vm60_vm0, %v17_v5  ;;  %v19_v8 = vld [vmem:[%s3894_s0 + $0x10] sm:$0xff]  ;;  %v20_v9 = vld [vmem:[%s3894_s0 + $0x18] sm:$0xff]  ;;  %v21_v10 = vld [vmem:[%s3894_s0 + $0x20] sm:$0xff] }
   0x4   :  { %2406 = vmatprep.subr.bf16.mxu0 %v2405_v3  ;;  %v22_v11 = vld [vmem:[%s3894_s0 + $0x28] sm:$0xff]  ;;  %v23_v12 = vld [vmem:[%s3894_s0 + $0x30] sm:$0xff]  ;;  %v24_v13 = vld [vmem:[%s3894_s0 + $0x38] sm:$0xff] }
   0x5   :  { %2408 = vmatpush3.bf16.msra.mxu0 %v2405_v3  ;;  %v25_v14 = vld [vmem:[%s3894_s0 + $0x40] sm:$0xff]  ;;  %v26_v15 = vld [vmem:[%s3894_s0 + $0x48] sm:$0xff]  ;;  %v27_v16 = vld [vmem:[%s3894_s0 + $0x50] sm:$0xff] }
   0x6   :  { %2410 = vmatprep.subr.bf16.mxu0 %v2409_v6  ;;  %v28_v17 = vld [vmem:[%s3894_s0 + $0x58] sm:$0xff]  ;;  %v29_v18 = vld [vmem:[%s3894_s0 + $0x60] sm:$0xff]  ;;  %v30_v19 = vld [vmem:[%s3894_s0 + $0x68] sm:$0xff] }
   0x7   :  { %v31_v20 = vld [vmem:[%s3894_s0 + $0x70] sm:$0xff]  ;;  %v32_v21 = vld [vmem:[%s3894_s0 + $0x78] sm:$0xff]  ;;  %v33_v22 = vld [vmem:[%s3894_s0 + $0x80] sm:$0xff] }
   0x8   :  { %v34_v23 = vld [vmem:[%s3894_s0 + $0x88] sm:$0xff]  ;;  %v35_v24 = vld [vmem:[%s3894_s0 + $0x90] sm:$0xff]  ;;  %v36_v25 = vld [vmem:[%s3894_s0 + $0x98] sm:$0xff] }
   0x9   :  { %2412 = vmatpush3.bf16.msra.mxu0 %v2409_v6  ;;  %v37_v26 = vld [vmem:[%s3894_s0 + $0xa0] sm:$0xff]  ;;  %v38_v27 = vld [vmem:[%s3894_s0 + $0xa8] sm:$0xff]  ;;  %v39_v28 = vld [vmem:[%s3894_s0 + $0xb0] sm:$0xff] }
   0xa   :  { %v40_v29 = vld [vmem:[%s3894_s0 + $0xb8] sm:$0xff]  ;;  %v41_v30 = vld [vmem:[%s3894_s0 + $0xc0] sm:$0xff]  ;;  %v42_v31 = vld [vmem:[%s3894_s0 + $0xc8] sm:$0xff] }
   0xb   :  { %v43_v32 = vld [vmem:[%s3894_s0 + $0xd0] sm:$0xff]  ;;  %v44_v33 = vld [vmem:[%s3894_s0 + $0xd8] sm:$0xff]  ;;  %v45_v34 = vld [vmem:[%s3894_s0 + $0xe0] sm:$0xff] }
   0xc   :  { %2134 = vmatmul.mubr.msk.f32.vlgmr.msra.gmra.mrb[0].mxu0 %vm60_vm0, %v18_v7  ;;  %v46_v35 = vld [vmem:[%s3894_s0 + $0xe8] sm:$0xff]  ;;  %v47_v36 = vld [vmem:[%s3894_s0 + $0xf0] sm:$0xff]  ;;  %v48_v37 = vld [vmem:[%s3894_s0 + $0xf8] sm:$0xff]  ;;  %s2863_s0 = smov 96  }
   0xd   :  { %2136 = vmatprep.mubr.msk.f32.mxu0 %vm60_vm0, %v19_v8  ;;  %v3033_v38 = vld [vmem:[%s3895_s2] ss:$0 sm:$0xff]  ;;  %s2864_s2 = smov 64   ;;  %vm3223_vm1 = vmpackc.low %vm60_vm0, %vm60_vm0 }
  0x10   :  { %2137 = vmatmul.mubr.msk.f32.gmra.mrb[2].mxu0 %vm60_vm0, %v20_v9 }
  0x11   :  { %2139 = vmatprep.mubr.msk.f32.mxu0 %vm60_vm0, %v21_v10 }
  0x14   :  { %2140 = vmatmul.mubr.msk.f32.gmra.mrb[4].mxu0 %vm60_vm0, %v22_v11 }
  0x15   :  { %2142 = vmatprep.mubr.msk.f32.mxu0 %vm60_vm0, %v23_v12 }
  0x18   :  { %2143 = vmatmul.mubr.msk.f32.gmra.mrb[6].mxu0 %vm60_vm0, %v24_v13 }
  0x19   :  { %2145 = vmatprep.mubr.msk.f32.mxu0 %vm60_vm0, %v25_v14 }
  0x1c   :  { %2146 = vmatmul.mubr.msk.f32.gmra.mrb[8].mxu0 %vm60_vm0, %v26_v15 }
  0x1d   :  { %2148 = vmatprep.mubr.msk.f32.mxu0 %vm60_vm0, %v27_v16 }
  0x20   :  { %2149 = vmatmul.mubr.msk.f32.gmra.mrb[10].mxu0 %vm60_vm0, %v28_v17 }
  0x21   :  { %2151 = vmatprep.mubr.msk.f32.mxu0 %vm60_vm0, %v29_v18 }
  0x24   :  { %2152 = vmatmul.mubr.msk.f32.gmra.mrb[12].mxu0 %vm60_vm0, %v30_v19 }
  0x25   :  { %2154 = vmatprep.mubr.msk.f32.mxu0 %vm60_vm0, %v31_v20 }
  0x28   :  { %2155 = vmatmul.mubr.msk.f32.gmra.mrb[14].mxu0 %vm60_vm0, %v32_v21 }
  0x29   :  { %2157 = vmatprep.mubr.msk.f32.mxu0 %vm60_vm0, %v33_v22 }
  0x2c   :  { %2158 = vmatmul.mubr.msk.f32.gmra.mrb[16].mxu0 %vm60_vm0, %v34_v23 }
  0x2d   :  { %2160 = vmatprep.mubr.msk.f32.mxu0 %vm60_vm0, %v35_v24 }
  0x30   :  { %2161 = vmatmul.mubr.msk.f32.gmra.mrb[18].mxu0 %vm60_vm0, %v36_v25 }
  0x31   :  { %2163 = vmatprep.mubr.msk.f32.mxu0 %vm60_vm0, %v37_v26 }
  0x34   :  { %2164 = vmatmul.mubr.msk.f32.gmra.mrb[20].mxu0 %vm60_vm0, %v38_v27 }
  0x35   :  { %2166 = vmatprep.mubr.msk.f32.mxu0 %vm60_vm0, %v39_v28 }
  0x38   :  { %2167 = vmatmul.mubr.msk.f32.gmra.mrb[22].mxu0 %vm60_vm0, %v40_v29 }
  0x39   :  { %2169 = vmatprep.mubr.msk.f32.mxu0 %vm60_vm0, %v41_v30 }
  0x3c   :  { %2170 = vmatmul.mubr.msk.f32.gmra.mrb[24].mxu0 %vm60_vm0, %v42_v31 }
  0x3d   :  { %2172 = vmatprep.mubr.msk.f32.mxu0 %vm60_vm0, %v43_v32 }
  0x40   :  { %2173 = vmatmul.mubr.msk.f32.gmra.mrb[26].mxu0 %vm60_vm0, %v44_v33 }
  0x41   :  { %2175 = vmatprep.mubr.msk.f32.mxu0 %vm60_vm0, %v45_v34 }
  0x44   :  { %2176 = vmatmul.mubr.msk.f32.gmra.mrb[28].mxu0 %vm60_vm0, %v46_v35 }
  0x45   :  { %2178 = vmatprep.mubr.msk.f32.mxu0 %vm60_vm0, %v47_v36 }
  0x48   :  { %2179 = vmatmul.mubr.msk.f32.gmra.mrb[30].mxu0 %vm60_vm0, %v48_v37 }
  0xdf   :  { %v2135_v39 = vpop.f32.mrb[0].mxu0 }
  0xe0   :  { %v3036_v40 = vadd.f32 %v2135_v39, %v3033_v38  ;;  %v223_v41 = vpop.f32.mrb[1].mxu0 }
  0xe1   :  { %v224_v42 = vadd.f32 %v3033_v38, %v223_v41 }
  0xe3   :  { %2213 = vmatprep.mubr.msk.f32.mxu1 %vm60_vm0, %v224_v42  ;;  %v3041_v43 = vpack.i.bf16 %v3036_v40, %v224_v42  ;;  %v2138_v44 = vpop.f32.mrb[2].mxu0 }
  0xe4   :  { %v3044_v45 = vadd.f32 %v2138_v44, %v3033_v38  ;;  %v233_v46 = vpop.f32.mrb[3].mxu0 }
  0xe5   :  { %2576 = vrot.lane.b32.xlu0 %v3041_v43, %s2863_s0  ;;  %v3049_v47 = vadd.f32 %v3033_v38, %v233_v46 }
  0xe7   :  { %v3053_v48 = vpack.i.bf16 %v3044_v45, %v3049_v47  ;;  %v2141_v49 = vpop.f32.mrb[4].mxu0 }
  0xe8   :  { %v3056_v50 = vadd.f32 %v2141_v49, %v3033_v38  ;;  %v243_v51 = vpop.f32.mrb[5].mxu0 }
  0xe9   :  { %2581 = vrot.lane.b32.xlu0 %v3053_v48, %s2863_s0  ;;  %v3061_v52 = vadd.f32 %v3033_v38, %v243_v51 }
  0xeb   :  { %v3065_v53 = vpack.i.bf16 %v3056_v50, %v3061_v52  ;;  %v2144_v54 = vpop.f32.mrb[6].mxu0 }
  0xec   :  { %v3068_v55 = vadd.f32 %v2144_v54, %v3033_v38  ;;  %v253_v56 = vpop.f32.mrb[7].mxu0 }
  0xed   :  { %2586 = vrot.lane.b32.xlu1 %v3065_v53, %s2863_s0  ;;  %v3073_v57 = vadd.f32 %v3033_v38, %v253_v56 }
  0xef   :  { %v3077_v58 = vpack.i.bf16 %v3068_v55, %v3073_v57  ;;  %v2147_v59 = vpop.f32.mrb[8].mxu0 }
  0xf0   :  { %v3080_v60 = vadd.f32 %v2147_v59, %v3033_v38  ;;  %v263_v61 = vpop.f32.mrb[9].mxu0 }
  0xf1   :  { %2591 = vrot.lane.b32.xlu1 %v3077_v58, %s2863_s0  ;;  %v3085_v62 = vadd.f32 %v3033_v38, %v263_v61 }
  0xf3   :  { %v3089_v63 = vpack.i.bf16 %v3080_v60, %v3085_v62  ;;  %v2150_v0 = vpop.f32.mrb[10].mxu0 }
  0xf4   :  { %v3092_v1 = vadd.f32 %v2150_v0, %v3033_v38  ;;  %v273_v2 = vpop.f32.mrb[11].mxu0 }
  0xf5   :  { %2596 = vrot.lane.b32.xlu0 %v3089_v63, %s2863_s0  ;;  %v3097_v3 = vadd.f32 %v3033_v38, %v273_v2 }
  0xf7   :  { %v2153_v4 = vpop.f32.mrb[12].mxu0  ;;  %v3101_v5 = vpack.i.bf16 %v3092_v1, %v3097_v3 }
  0xf8   :  { %v3104_v6 = vadd.f32 %v2153_v4, %v3033_v38  ;;  %v283_v7 = vpop.f32.mrb[13].mxu0 }
  0xf9   :  { %v3107_v8 = vadd.f32 %v3033_v38, %v283_v7  ;;  %2601 = vrot.lane.b32.xlu1 %v3101_v5, %s2863_s0 }
  0xfb   :  { %v2156_v9 = vpop.f32.mrb[14].mxu0  ;;  %v2605_v10 = vpack.i.bf16 %v3104_v6, %v3107_v8 }
  0xfc   :  { %v3114_v11 = vadd.f32 %v2156_v9, %v3033_v38  ;;  %v293_v12 = vpop.f32.mrb[15].mxu0 }
  0xfd   :  { %v3117_v13 = vadd.f32 %v3033_v38, %v293_v12  ;;  %2606 = vrot.lane.b32.xlu0 %v2605_v10, %s2863_s0 }
  0xff   :  { %v2159_v14 = vpop.f32.mrb[16].mxu0  ;;  %v2610_v15 = vpack.i.bf16 %v3114_v11, %v3117_v13 }
 0x100   :  { %v3123_v16 = vadd.f32 %v2159_v14, %v3033_v38  ;;  %v303_v17 = vpop.f32.mrb[17].mxu0 }
 0x101   :  { %v3126_v18 = vadd.f32 %v3033_v38, %v303_v17  ;;  %2611 = vrot.lane.b32.xlu1 %v2610_v15, %s2863_s0 }
 0x103   :  { %v2162_v19 = vpop.f32.mrb[18].mxu0  ;;  %v2615_v20 = vpack.i.bf16 %v3123_v16, %v3126_v18 }
 0x104   :  { %v3132_v21 = vadd.f32 %v2162_v19, %v3033_v38  ;;  %v313_v22 = vpop.f32.mrb[19].mxu0 }
 0x105   :  { %v3135_v23 = vadd.f32 %v3033_v38, %v313_v22  ;;  %2616 = vrot.lane.b32.xlu0 %v2615_v20, %s2863_s0 }
 0x107   :  { %v2165_v24 = vpop.f32.mrb[20].mxu0  ;;  %v2620_v25 = vpack.i.bf16 %v3132_v21, %v3135_v23 }
 0x108   :  { %v3141_v26 = vadd.f32 %v2165_v24, %v3033_v38  ;;  %v323_v27 = vpop.f32.mrb[21].mxu0 }
 0x109   :  { %v3144_v28 = vadd.f32 %v3033_v38, %v323_v27  ;;  %2621 = vrot.lane.b32.xlu1 %v2620_v25, %s2863_s0 }
 0x10b   :  { %v2168_v29 = vpop.f32.mrb[22].mxu0  ;;  %v2625_v30 = vpack.i.bf16 %v3141_v26, %v3144_v28 }
 0x10c   :  { %v3150_v31 = vadd.f32 %v2168_v29, %v3033_v38  ;;  %v333_v32 = vpop.f32.mrb[23].mxu0 }
 0x10d   :  { %v3153_v33 = vadd.f32 %v3033_v38, %v333_v32  ;;  %2626 = vrot.lane.b32.xlu0 %v2625_v30, %s2863_s0 }
 0x10f   :  { %v2171_v34 = vpop.f32.mrb[24].mxu0  ;;  %v2630_v35 = vpack.i.bf16 %v3150_v31, %v3153_v33 }
 0x110   :  { %v3159_v36 = vadd.f32 %v2171_v34, %v3033_v38  ;;  %v343_v37 = vpop.f32.mrb[25].mxu0 }
 0x111   :  { %v3162_v39 = vadd.f32 %v3033_v38, %v343_v37  ;;  %2631 = vrot.lane.b32.xlu1 %v2630_v35, %s2863_s0 }
 0x113   :  { %v2174_v41 = vpop.f32.mrb[26].mxu0  ;;  %v2635_v42 = vpack.i.bf16 %v3159_v36, %v3162_v39 }
 0x114   :  { %v3168_v44 = vadd.f32 %v2174_v41, %v3033_v38  ;;  %v353_v46 = vpop.f32.mrb[27].mxu0 }
 0x115   :  { %v3171_v49 = vadd.f32 %v3033_v38, %v353_v46  ;;  %2636 = vrot.lane.b32.xlu0 %v2635_v42, %s2863_s0 }
 0x117   :  { %v2177_v51 = vpop.f32.mrb[28].mxu0  ;;  %v2640_v54 = vpack.i.bf16 %v3168_v44, %v3171_v49 }
 0x118   :  { %v3177_v56 = vadd.f32 %v2177_v51, %v3033_v38  ;;  %v363_v59 = vpop.f32.mrb[29].mxu0 }
 0x119   :  { %v3180_v61 = vadd.f32 %v3033_v38, %v363_v59  ;;  %2641 = vrot.lane.b32.xlu1 %v2640_v54, %s2863_s0 }
 0x11b   :  { %v2180_v0 = vpop.f32.mrb[30].mxu0  ;;  %v3185_v2 = vpack.i.bf16 %v3177_v56, %v3180_v61 }
 0x11c   :  { %v3188_v4 = vadd.f32 %v2180_v0, %v3033_v38  ;;  %v373_v7 = vpop.f32.mrb[31].mxu0 }
 0x11d   :  { %v3191_v9 = vadd.f32 %v3033_v38, %v373_v7  ;;  %2646 = vrot.lane.b32.xlu0 %v3185_v2, %s2863_s0 }
 0x11f   :  { %v3197_v12 = vpack.i.bf16 %v3188_v4, %v3191_v9 }
 0x121   :  { %2651 = vrot.lane.b32.xlu1 %v3197_v12, %s2863_s0  ;;  %2661 = vrot.lane.b32.xlu0 %v3053_v48, %s2864_s2 }
 0x125   :  { %2656 = vrot.lane.b32.xlu1 %v3041_v43, %s2864_s2  ;;  %2671 = vrot.lane.b32.xlu0 %v3077_v58, %s2864_s2 }
 0x129   :  { %2666 = vrot.lane.b32.xlu1 %v3065_v53, %s2864_s2  ;;  %2681 = vrot.lane.b32.xlu0 %v3101_v5, %s2864_s2 }
 0x12d   :  { %2676 = vrot.lane.b32.xlu1 %v3089_v63, %s2864_s2  ;;  %2691 = vrot.lane.b32.xlu0 %v2610_v15, %s2864_s2 }
 0x131   :  { %2686 = vrot.lane.b32.xlu1 %v2605_v10, %s2864_s2  ;;  %2701 = vrot.lane.b32.xlu0 %v2620_v25, %s2864_s2 }
 0x135   :  { %2696 = vrot.lane.b32.xlu1 %v2615_v20, %s2864_s2  ;;  %2711 = vrot.lane.b32.xlu0 %v2630_v35, %s2864_s2 }
 0x139   :  { %2706 = vrot.lane.b32.xlu1 %v2625_v30, %s2864_s2  ;;  %2721 = vrot.lane.b32.xlu0 %v2640_v54, %s2864_s2 }
 0x13d   :  { %2716 = vrot.lane.b32.xlu1 %v2635_v42, %s2864_s2 }
 0x157   :  { %v2577_v38 = vpop.permute.xlu0 %2576 }
 0x158   :  { %v2579_v43 = vunpack.i.h.bf16 %v2577_v38  ;;  %v2578_v48 = vunpack.i.l.bf16 %v2577_v38 }
 0x15a   :  { %v2413_v58 = vpack.c.bf16 %v2579_v43, %v2578_v48 }
 0x15b   :  { %v2582_v63 = vpop.permute.xlu0 %2581 }
 0x15c   :  { %2415 = vmatprep.subr.msk.bf16.mxu1 %vm3223_vm1, %v2413_v58  ;;  %v2584_v5 = vunpack.i.h.bf16 %v2582_v63  ;;  %v2583_v10 = vunpack.i.l.bf16 %v2582_v63 }
 0x15d   :  { %2418 = vmatpush3.bf16.xpose.msk.msra.mxu1 %vm3223_vm1, %v2413_v58 }
 0x15e   :  { %v2419_v14 = vpack.c.bf16 %v2584_v5, %v2583_v10 }
 0x15f   :  { %v2587_v15 = vpop.permute.xlu1 %2586 }
 0x160   :  { %2421 = vmatprep.subr.msk.bf16.mxu1 %vm3223_vm1, %v2419_v14  ;;  %v2589_v17 = vunpack.i.h.bf16 %v2587_v15  ;;  %v2588_v19 = vunpack.i.l.bf16 %v2587_v15 }
 0x162   :  { %v2425_v20 = vpack.c.bf16 %v2589_v17, %v2588_v19 }
 0x163   :  { %v2592_v22 = vpop.permute.xlu1 %2591 }
 0x164   :  { %v2594_v24 = vunpack.i.h.bf16 %v2592_v22  ;;  %v2593_v25 = vunpack.i.l.bf16 %v2592_v22 }
 0x165   :  { %2424 = vmatpush3.bf16.xpose.msk.msra.mxu1 %vm3223_vm1, %v2419_v14 }
 0x166   :  { %2427 = vmatprep.subr.msk.bf16.mxu1 %vm3223_vm1, %v2425_v20  ;;  %v2431_v27 = vpack.c.bf16 %v2594_v24, %v2593_v25 }
 0x167   :  { %v2597_v29 = vpop.permute.xlu0 %2596 }
 0x168   :  { %v2599_v30 = vunpack.i.h.bf16 %v2597_v29  ;;  %v2598_v32 = vunpack.i.l.bf16 %v2597_v29 }
 0x16a   :  { %v2437_v34 = vpack.c.bf16 %v2599_v30, %v2598_v32 }
 0x16b   :  { %v2602_v35 = vpop.permute.xlu1 %2601 }
 0x16c   :  { %v2604_v37 = vunpack.i.h.bf16 %v2602_v35  ;;  %v2603_v41 = vunpack.i.l.bf16 %v2602_v35 }
 0x16d   :  { %2430 = vmatpush3.bf16.xpose.msk.msra.mxu1 %vm3223_vm1, %v2425_v20 }
 0x16e   :  { %2433 = vmatprep.subr.msk.bf16.mxu1 %vm3223_vm1, %v2431_v27  ;;  %v2443_v46 = vpack.c.bf16 %v2604_v37, %v2603_v41 }
 0x16f   :  { %v2607_v42 = vpop.permute.xlu0 %2606 }
 0x170   :  { %v2609_v59 = vunpack.i.h.bf16 %v2607_v42  ;;  %v2608_v0 = vunpack.i.l.bf16 %v2607_v42 }
 0x172   :  { %v2449_v38 = vpack.c.bf16 %v2609_v59, %v2608_v0 }
 0x173   :  { %v2612_v51 = vpop.permute.xlu1 %2611 }
 0x174   :  { %v2614_v48 = vunpack.i.h.bf16 %v2612_v51  ;;  %v2613_v58 = vunpack.i.l.bf16 %v2612_v51 }
 0x175   :  { %2436 = vmatpush3.bf16.xpose.msk.msra.mxu1 %vm3223_vm1, %v2431_v27 }
 0x176   :  { %2439 = vmatprep.subr.msk.bf16.mxu1 %vm3223_vm1, %v2437_v34  ;;  %v2455_v10 = vpack.c.bf16 %v2614_v48, %v2613_v58 }
 0x177   :  { %v2617_v54 = vpop.permute.xlu0 %2616 }
 0x178   :  { %v2619_v15 = vunpack.i.h.bf16 %v2617_v54  ;;  %v2618_v17 = vunpack.i.l.bf16 %v2617_v54 }
 0x17a   :  { %v2493_v20 = vpack.c.bf16 %v2619_v15, %v2618_v17 }
 0x17b   :  { %v2622_v7 = vpop.permute.xlu1 %2621 }
 0x17c   :  { %v2624_v25 = vunpack.i.h.bf16 %v2622_v7  ;;  %v2623_v27 = vunpack.i.l.bf16 %v2622_v7 }
 0x17d   :  { %2442 = vmatpush3.bf16.xpose.msk.msra.mxu1 %vm3223_vm1, %v2437_v34 }
 0x17e   :  { %2445 = vmatprep.subr.msk.bf16.mxu1 %vm3223_vm1, %v2443_v46  ;;  %v2499_v41 = vpack.c.bf16 %v2624_v25, %v2623_v27 }
 0x17f   :  { %v2627_v43 = vpop.permute.xlu0 %2626 }
 0x180   :  { %v2629_v0 = vunpack.i.h.bf16 %v2627_v43  ;;  %v2628_v7 = vunpack.i.l.bf16 %v2627_v43 }
 0x183   :  { %v3253_v63 = vpop.permute.xlu1 %2631 }
 0x185   :  { %2448 = vmatpush3.bf16.xpose.msk.msra.mxu1 %vm3223_vm1, %v2443_v46 }
 0x186   :  { %2451 = vmatprep.subr.msk.bf16.mxu1 %vm3223_vm1, %v2449_v38 }
 0x187   :  { %v3255_v5 = vpop.permute.xlu0 %2636 }
 0x18b   :  { %v3259_v14 = vpop.permute.xlu1 %2641 }
 0x18d   :  { %2454 = vmatpush3.bf16.xpose.msk.msra.mxu1 %vm3223_vm1, %v2449_v38 }
 0x18e   :  { %2457 = vmatprep.subr.msk.bf16.mxu1 %vm3223_vm1, %v2455_v10 }
 0x18f   :  { %v3263_v19 = vpop.permute.xlu0 %2646 }
 0x193   :  { %v3265_v22 = vpop.permute.xlu1 %2651  ;;  %v2662_v24 = vpop.permute.xlu0 %2661 }
 0x194   :  { %v2664_v30 = vunpack.i.h.bf16 %v2662_v24  ;;  %v2663_v32 = vunpack.i.l.bf16 %v2662_v24 }
 0x195   :  { %2460 = vmatpush3.bf16.xpose.msk.msra.mxu1 %vm3223_vm1, %v2455_v10 }
 0x196   :  { %2495 = vmatprep.subr.msk.bf16.mxu1 %vm3223_vm1, %v2493_v20  ;;  %v2465_v46 = vpack.c.bf16 %v2664_v30, %v2663_v32 }
 0x197   :  { %v2657_v29 = vpop.permute.xlu1 %2656  ;;  %v2672_v59 = vpop.permute.xlu0 %2671 }
 0x198   :  { %v2659_v34 = vunpack.i.h.bf16 %v2657_v29  ;;  %v2658_v35 = vunpack.i.l.bf16 %v2657_v29  ;;  %v2674_v38 = vunpack.i.h.bf16 %v2672_v59  ;;  %v2673_v48 = vunpack.i.l.bf16 %v2672_v59 }
 0x19a   :  { %v2461_v37 = vpack.c.bf16 %v2659_v34, %v2658_v35  ;;  %v2473_v10 = vpack.c.bf16 %v2674_v38, %v2673_v48 }
 0x19b   :  { %v2667_v42 = vpop.permute.xlu1 %2666  ;;  %v2682_v43 = vpop.permute.xlu0 %2681 }
 0x19c   :  { %v2669_v51 = vunpack.i.h.bf16 %v2667_v42  ;;  %v2668_v54 = vunpack.i.l.bf16 %v2667_v42  ;;  %2214 = vmatmul.mubr.msk.f32.vlgmr.msra.gmra.mrb[0].mxu1 %vm60_vm0, %v3036_v40  ;;  %2462 = vmatprep.subr.bf16.mxu0 %v2461_v37  ;;  %v2683_v24 = vunpack.i.l.bf16 %v2682_v43 }
 0x19d   :  { %2216 = vmatprep.mubr.msk.f32.mxu1 %vm60_vm0, %v3049_v47  ;;  %2464 = vmatpush3.bf16.msra.mxu0 %v2461_v37  ;;  %v2505_v47 = vpack.c.bf16 %v2629_v0, %v2628_v7 }
 0x19e   :  { %2498 = vmatpush3.bf16.xpose.msk.msra.mxu1 %vm3223_vm1, %v2493_v20  ;;  %2466 = vmatprep.subr.bf16.mxu0 %v2465_v46  ;;  %v2469_v58 = vpack.c.bf16 %v2669_v51, %v2668_v54  ;;  %v2684_v20 = vunpack.i.h.bf16 %v2682_v43 }
 0x19f   :  { %2501 = vmatprep.subr.msk.bf16.mxu1 %vm3223_vm1, %v2499_v41  ;;  %v2677_v40 = vpop.permute.xlu1 %2676 }
 0x1a0   :  { %2217 = vmatmul.mubr.msk.f32.gmra.mrb[2].mxu1 %vm60_vm0, %v3044_v45  ;;  %v2679_v15 = vunpack.i.h.bf16 %v2677_v40  ;;  %v2678_v17 = vunpack.i.l.bf16 %v2677_v40  ;;  %v2634_v45 = vunpack.i.h.bf16 %v3253_v63  ;;  %v2481_v27 = vpack.c.bf16 %v2684_v20, %v2683_v24 }
 0x1a1   :  { %2219 = vmatprep.mubr.msk.f32.mxu1 %vm60_vm0, %v3061_v52  ;;  %2468 = vmatpush3.bf16.msra.mxu0 %v2465_v46  ;;  %v2633_v52 = vunpack.i.l.bf16 %v3253_v63  ;;  %v2692_v63 = vpop.permute.xlu0 %2691 }
 0x1a2   :  { %2470 = vmatprep.subr.bf16.mxu0 %v2469_v58  ;;  %v2477_v25 = vpack.c.bf16 %v2679_v15, %v2678_v17  ;;  %v2694_v32 = vunpack.i.h.bf16 %v2692_v63  ;;  %v2693_v34 = vunpack.i.l.bf16 %v2692_v63 }
 0x1a4   :  { %2220 = vmatmul.mubr.msk.f32.gmra.mrb[4].mxu1 %vm60_vm0, %v3056_v50  ;;  %v2687_v50 = vpop.permute.xlu1 %2686  ;;  %v2489_v37 = vpack.c.bf16 %v2694_v32, %v2693_v34 }
 0x1a5   :  { %2222 = vmatprep.mubr.msk.f32.mxu1 %vm60_vm0, %v3073_v57  ;;  %2472 = vmatpush3.bf16.msra.mxu0 %v2469_v58  ;;  %v2511_v57 = vpack.c.bf16 %v2634_v45, %v2633_v52  ;;  %v2689_v29 = vunpack.i.h.bf16 %v2687_v50  ;;  %v2688_v30 = vunpack.i.l.bf16 %v2687_v50 }
 0x1a6   :  { %2504 = vmatpush3.bf16.xpose.msk.msra.mxu1 %vm3223_vm1, %v2499_v41  ;;  %2474 = vmatprep.subr.bf16.mxu0 %v2473_v10 }
 0x1a7   :  { %2507 = vmatprep.subr.msk.bf16.mxu1 %vm3223_vm1, %v2505_v47  ;;  %v2485_v35 = vpack.c.bf16 %v2689_v29, %v2688_v30 }
 0x1a8   :  { %2223 = vmatmul.mubr.msk.f32.gmra.mrb[6].mxu1 %vm60_vm0, %v3068_v55  ;;  %v2639_v55 = vunpack.i.h.bf16 %v3255_v5 }
 0x1a9   :  { %2225 = vmatprep.mubr.msk.f32.mxu1 %vm60_vm0, %v3085_v62  ;;  %2476 = vmatpush3.bf16.msra.mxu0 %v2473_v10  ;;  %v2638_v62 = vunpack.i.l.bf16 %v3255_v5 }
 0x1aa   :  { %2478 = vmatprep.subr.bf16.mxu0 %v2477_v25 }
 0x1ac   :  { %2226 = vmatmul.mubr.msk.f32.gmra.mrb[8].mxu1 %vm60_vm0, %v3080_v60  ;;  %v2697_v60 = vpop.permute.xlu1 %2696 }
 0x1ad   :  { %2228 = vmatprep.mubr.msk.f32.mxu1 %vm60_vm0, %v3097_v3  ;;  %2480 = vmatpush3.bf16.msra.mxu0 %v2477_v25  ;;  %v2517_v3 = vpack.c.bf16 %v2639_v55, %v2638_v62  ;;  %v2699_v41 = vunpack.i.h.bf16 %v2697_v60  ;;  %v2698_v42 = vunpack.i.l.bf16 %v2697_v60 }
 0x1ae   :  { %2510 = vmatpush3.bf16.xpose.msk.msra.mxu1 %vm3223_vm1, %v2505_v47  ;;  %2482 = vmatprep.subr.bf16.mxu0 %v2481_v27 }
 0x1af   :  { %2513 = vmatprep.subr.msk.bf16.mxu1 %vm3223_vm1, %v2511_v57  ;;  %v3321_v5 = vpack.c.bf16 %v2699_v41, %v2698_v42 }
 0x1b0   :  { %2229 = vmatmul.mubr.msk.f32.gmra.mrb[10].mxu1 %vm60_vm0, %v3092_v1  ;;  %v2644_v1 = vunpack.i.h.bf16 %v3259_v14 }
 0x1b1   :  { %2231 = vmatprep.mubr.msk.f32.mxu1 %vm60_vm0, %v3107_v8  ;;  %2484 = vmatpush3.bf16.msra.mxu0 %v2481_v27  ;;  %v2643_v8 = vunpack.i.l.bf16 %v3259_v14  ;;  %v2648_v14 = vunpack.i.l.bf16 %v3263_v19 }
 0x1b2   :  { %2486 = vmatprep.subr.bf16.mxu0 %v2485_v35 }
 0x1b4   :  { %2232 = vmatmul.mubr.msk.f32.gmra.mrb[12].mxu1 %vm60_vm0, %v3104_v6  ;;  %v2523_v6 = vpack.c.bf16 %v2644_v1, %v2643_v8 }
 0x1b5   :  { %2234 = vmatprep.mubr.msk.f32.mxu1 %vm60_vm0, %v3117_v13  ;;  %2488 = vmatpush3.bf16.msra.mxu0 %v2485_v35  ;;  %v2649_v13 = vunpack.i.h.bf16 %v3263_v19 }
 0x1b6   :  { %2516 = vmatpush3.bf16.xpose.msk.msra.mxu1 %vm3223_vm1, %v2511_v57  ;;  %2490 = vmatprep.subr.bf16.mxu0 %v2489_v37 }
 0x1b7   :  { %2519 = vmatprep.subr.msk.bf16.mxu1 %vm3223_vm1, %v2517_v3  ;;  %v2529_v46 = vpack.c.bf16 %v2649_v13, %v2648_v14 }
 0x1b8   :  { %2235 = vmatmul.mubr.msk.f32.gmra.mrb[14].mxu1 %vm60_vm0, %v3114_v11  ;;  %v2654_v11 = vunpack.i.h.bf16 %v3265_v22 }
 0x1b9   :  { %2492 = vmatpush3.bf16.msra.mxu0 %v2489_v37  ;;  %2325 = vmatprep.mubr.msk.f32.mxu1 %vm60_vm0, %v3126_v18  ;;  %v2653_v18 = vunpack.i.l.bf16 %v3265_v22 }
 0x1ba   :  { %2542 = vmatprep.subr.bf16.mxu0 %v3321_v5 }
 0x1bb   :  { %v2535_v51 = vpack.c.bf16 %v2654_v11, %v2653_v18 }
 0x1be   :  { %2522 = vmatpush3.bf16.xpose.msk.msra.mxu1 %vm3223_vm1, %v2517_v3 }
 0x1bf   :  { %2525 = vmatprep.subr.msk.bf16.mxu1 %vm3223_vm1, %v2523_v6 }
 0x1c6   :  { %2528 = vmatpush3.bf16.xpose.msk.msra.mxu1 %vm3223_vm1, %v2523_v6 }
 0x1c7   :  { %2531 = vmatprep.subr.msk.bf16.mxu1 %vm3223_vm1, %v2529_v46 }
 0x1ce   :  { %2534 = vmatpush3.bf16.xpose.msk.msra.mxu1 %vm3223_vm1, %v2529_v46 }
 0x1cf   :  { %2537 = vmatprep.subr.msk.bf16.mxu1 %vm3223_vm1, %v2535_v51 }
 0x1d6   :  { %2540 = vmatpush3.bf16.xpose.msk.msra.mxu1 %vm3223_vm1, %v2535_v51 }
 0x1dd   :  { %2326 = vmatmul.mubr.msk.f32.vlgmr.msra.gmra.mrb[16].mxu1 %vm60_vm0, %v3123_v16 }
 0x1de   :  { %2328 = vmatprep.mubr.msk.f32.mxu1 %vm60_vm0, %v3135_v23 }
 0x1e1   :  { %2329 = vmatmul.mubr.msk.f32.gmra.mrb[18].mxu1 %vm60_vm0, %v3132_v21 }
 0x1e2   :  { %2331 = vmatprep.mubr.msk.f32.mxu1 %vm60_vm0, %v3144_v28 }
 0x1e5   :  { %2332 = vmatmul.mubr.msk.f32.gmra.mrb[20].mxu1 %vm60_vm0, %v3141_v26 }
 0x1e6   :  { %2334 = vmatprep.mubr.msk.f32.mxu1 %vm60_vm0, %v3153_v33 }
 0x1e9   :  { %2335 = vmatmul.mubr.msk.f32.gmra.mrb[22].mxu1 %vm60_vm0, %v3150_v31 }
 0x1ea   :  { %2337 = vmatprep.mubr.msk.f32.mxu1 %vm60_vm0, %v3162_v39 }
 0x1ed   :  { %2338 = vmatmul.mubr.msk.f32.gmra.mrb[24].mxu1 %vm60_vm0, %v3159_v36 }
 0x1ee   :  { %2340 = vmatprep.mubr.msk.f32.mxu1 %vm60_vm0, %v3171_v49 }
 0x1f1   :  { %2341 = vmatmul.mubr.msk.f32.gmra.mrb[26].mxu1 %vm60_vm0, %v3168_v44 }
 0x1f2   :  { %2343 = vmatprep.mubr.msk.f32.mxu1 %vm60_vm0, %v3180_v61 }
 0x1f5   :  { %2344 = vmatmul.mubr.msk.f32.gmra.mrb[28].mxu1 %vm60_vm0, %v3177_v56 }
 0x1f6   :  { %2346 = vmatprep.mubr.msk.f32.mxu1 %vm60_vm0, %v3191_v9 }
 0x1f9   :  { %2347 = vmatmul.mubr.msk.f32.gmra.mrb[30].mxu1 %vm60_vm0, %v3188_v4 }
 0x26f   :  { %v2215_v16 = vpop.f32.mrb[0].mxu1 }
 0x270   :  { %v3376_v21 = vmul.f32 0.35355338, %v2215_v16  ;;  %v560_v23 = vpop.f32.mrb[1].mxu1 }
 0x271   :  { %v3378_v26 = vmul.f32 0.35355338, %v560_v23 }
 0x272   :  { %657 = vmax.xlane.f32.xlu1 %v3376_v21 }
 0x273   :  { %655 = vmax.xlane.f32.xlu0 %v3378_v26  ;;  %v2218_v28 = vpop.f32.mrb[2].mxu1 }
 0x274   :  { %v3382_v31 = vmul.f32 0.35355338, %v2218_v28  ;;  %v570_v33 = vpop.f32.mrb[3].mxu1 }
 0x275   :  { %v3385_v44 = vmul.f32 0.35355338, %v570_v33  ;;  %v3472_v33 = vpop.permute.xlu0 %2701 }
 0x277   :  { %661 = vmax.xlane.f32.xlu0 %v3382_v31  ;;  %v2221_v36 = vpop.f32.mrb[4].mxu1 }
 0x278   :  { %v580_v39 = vpop.f32.mrb[5].mxu1  ;;  %v3391_v4 = vmul.f32 0.35355338, %v2221_v36  ;;  %v3474_v36 = vpop.permute.xlu1 %2706 }
 0x279   :  { %v3387_v49 = vmul.f32 0.35355338, %v580_v39  ;;  %v3476_v39 = vpop.permute.xlu0 %2711 }
 0x27b   :  { %659 = vmax.xlane.f32.xlu0 %v3385_v44  ;;  %663 = vmax.xlane.f32.xlu1 %v3387_v49  ;;  %v2224_v56 = vpop.f32.mrb[6].mxu1 }
 0x27c   :  { %v590_v61 = vpop.f32.mrb[7].mxu1  ;;  %v3397_v22 = vmul.f32 0.35355338, %v2224_v56  ;;  %v3478_v56 = vpop.permute.xlu1 %2716 }
 0x27d   :  { %v3393_v9 = vmul.f32 0.35355338, %v590_v61  ;;  %v3480_v61 = vpop.permute.xlu0 %2721 }
 0x27f   :  { %665 = vmax.xlane.f32.xlu0 %v3391_v4  ;;  %667 = vmax.xlane.f32.xlu1 %v3393_v9  ;;  %v2227_v53 = vpop.f32.mrb[8].mxu1 }
 0x280   :  { %v600_v19 = vpop.f32.mrb[9].mxu1  ;;  %v3403_v7 = vmul.f32 0.35355338, %v2227_v53 }
 0x281   :  { %v3399_v54 = vmul.f32 0.35355338, %v600_v19 }
 0x283   :  { %669 = vmax.xlane.f32.xlu0 %v3397_v22  ;;  %671 = vmax.xlane.f32.xlu1 %v3399_v54  ;;  %v2230_v59 = vpop.f32.mrb[10].mxu1 }
 0x284   :  { %v610_v0 = vpop.f32.mrb[11].mxu1  ;;  %v3409_v40 = vmul.f32 0.35355338, %v2230_v59 }
 0x285   :  { %v3405_v38 = vmul.f32 0.35355338, %v610_v0 }
 0x287   :  { %673 = vmax.xlane.f32.xlu0 %v3403_v7  ;;  %675 = vmax.xlane.f32.xlu1 %v3405_v38  ;;  %v2233_v48 = vpop.f32.mrb[12].mxu1 }
 0x288   :  { %v620_v58 = vpop.f32.mrb[13].mxu1  ;;  %v3415_v17 = vmul.f32 0.35355338, %v2233_v48 }
 0x289   :  { %v3411_v47 = vmul.f32 0.35355338, %v620_v58 }
 0x28b   :  { %677 = vmax.xlane.f32.xlu0 %v3409_v40  ;;  %679 = vmax.xlane.f32.xlu1 %v3411_v47  ;;  %v2236_v10 = vpop.f32.mrb[14].mxu1 }
 0x28c   :  { %v630_v15 = vpop.f32.mrb[15].mxu1  ;;  %v3421_v45 = vmul.f32 0.35355338, %v2236_v10 }
 0x28d   :  { %v3417_v43 = vmul.f32 0.35355338, %v630_v15 }
 0x28f   :  { %681 = vmax.xlane.f32.xlu0 %v3415_v17  ;;  %683 = vmax.xlane.f32.xlu1 %v3417_v43 }
 0x293   :  { %685 = vmax.xlane.f32.xlu0 %v3421_v45 }
 0x2b0   :  { %v2327_v52 = vpop.f32.mrb[16].mxu1 }
 0x2b1   :  { %v3424_v20 = vmul.f32 0.35355338, %v2327_v52  ;;  %v1266_v24 = vpop.f32.mrb[17].mxu1 }
 0x2b2   :  { %v3426_v25 = vmul.f32 0.35355338, %v1266_v24 }
 0x2b3   :  { %1363 = vmax.xlane.f32.xlu0 %v3424_v20 }
 0x2b4   :  { %v2330_v50 = vpop.f32.mrb[18].mxu1  ;;  %1361 = vmax.xlane.f32.xlu1 %v3426_v25 }
 0x2b5   :  { %v3430_v57 = vmul.f32 0.35355338, %v2330_v50  ;;  %v1276_v27 = vpop.f32.mrb[19].mxu1 }
 0x2b6   :  { %v3432_v29 = vmul.f32 0.35355338, %v1276_v27 }
 0x2b7   :  { %1367 = vmax.xlane.f32.xlu0 %v3430_v57 }
 0x2b8   :  { %v2333_v30 = vpop.f32.mrb[20].mxu1  ;;  %1365 = vmax.xlane.f32.xlu1 %v3432_v29 }
 0x2b9   :  { %v3436_v63 = vmul.f32 0.35355338, %v2333_v30  ;;  %v1286_v55 = vpop.f32.mrb[21].mxu1 }
 0x2ba   :  { %v3438_v62 = vmul.f32 0.35355338, %v1286_v55 }
 0x2bb   :  { %1371 = vmax.xlane.f32.xlu0 %v3436_v63 }
 0x2bc   :  { %v2336_v32 = vpop.f32.mrb[22].mxu1  ;;  %1369 = vmax.xlane.f32.xlu1 %v3438_v62 }
 0x2bd   :  { %v3442_v34 = vmul.f32 0.35355338, %v2336_v32  ;;  %v1296_v35 = vpop.f32.mrb[23].mxu1 }
 0x2be   :  { %v3444_v60 = vmul.f32 0.35355338, %v1296_v35 }
 0x2bf   :  { %1375 = vmax.xlane.f32.xlu0 %v3442_v34 }
 0x2c0   :  { %v2339_v3 = vpop.f32.mrb[24].mxu1  ;;  %1373 = vmax.xlane.f32.xlu1 %v3444_v60 }
 0x2c1   :  { %v3448_v37 = vmul.f32 0.35355338, %v2339_v3  ;;  %v1306_v41 = vpop.f32.mrb[25].mxu1 }
 0x2c2   :  { %v3450_v42 = vmul.f32 0.35355338, %v1306_v41 }
 0x2c3   :  { %1379 = vmax.xlane.f32.xlu0 %v3448_v37 }
 0x2c4   :  { %v2342_v1 = vpop.f32.mrb[26].mxu1  ;;  %1377 = vmax.xlane.f32.xlu1 %v3450_v42 }
 0x2c5   :  { %v3454_v8 = vmul.f32 0.35355338, %v2342_v1  ;;  %v1316_v6 = vpop.f32.mrb[27].mxu1 }
 0x2c6   :  { %v3456_v13 = vmul.f32 0.35355338, %v1316_v6 }
 0x2c7   :  { %1383 = vmax.xlane.f32.xlu0 %v3454_v8 }
 0x2c8   :  { %v2345_v14 = vpop.f32.mrb[28].mxu1  ;;  %1381 = vmax.xlane.f32.xlu1 %v3456_v13 }
 0x2c9   :  { %v3460_v46 = vmul.f32 0.35355338, %v2345_v14  ;;  %v1326_v11 = vpop.f32.mrb[29].mxu1 }
 0x2ca   :  { %v3462_v18 = vmul.f32 0.35355338, %v1326_v11 }
 0x2cb   :  { %1387 = vmax.xlane.f32.xlu0 %v3460_v46 }
 0x2cc   :  { %v2348_v51 = vpop.f32.mrb[30].mxu1  ;;  %1385 = vmax.xlane.f32.xlu1 %v3462_v18 }
 0x2cd   :  { %v3466_v16 = vmul.f32 0.35355338, %v2348_v51  ;;  %v1336_v23 = vpop.f32.mrb[31].mxu1 }
 0x2ce   :  { %v3468_v28 = vmul.f32 0.35355338, %v1336_v23 }
 0x2cf   :  { %1391 = vmax.xlane.f32.xlu0 %v3466_v16 }
 0x2d0   :  { %1389 = vmax.xlane.f32.xlu1 %v3468_v28 }
 0x2ff   :  { %v658_v53 = vpop.xlane.xlu1 %657 }
 0x300   :  { %v688_v19 = vsub.f32 %v3376_v21, %v658_v53  ;;  %v656_v59 = vpop.xlane.xlu0 %655 }
 0x301   :  { %v687_v0 = vsub.f32 %v3378_v26, %v656_v59 }
 0x302   :  { %v705_v48 = vmul.f32 1.442695, %v688_v19 }
 0x303   :  { %v703_v58 = vmul.f32 1.442695, %v687_v0 }
 0x304   :  { %2735 = vpow2.f32 %v705_v48  ;;  %v662_v10 = vpop.xlane.xlu0 %661 }
 0x305   :  { %2737 = vpow2.f32 %v703_v58  ;;  %v690_v15 = vsub.f32 %v3382_v31, %v662_v10 }
 0x307   :  { %v709_v52 = vmul.f32 1.442695, %v690_v15 }
 0x308   :  { %v660_v24 = vpop.xlane.xlu0 %659  ;;  %v664_v50 = vpop.xlane.xlu1 %663 }
 0x309   :  { %2739 = vpow2.f32 %v709_v52  ;;  %v689_v27 = vsub.f32 %v3385_v44, %v660_v24  ;;  %v691_v30 = vsub.f32 %v3387_v49, %v664_v50 }
 0x30b   :  { %v707_v55 = vmul.f32 1.442695, %v689_v27  ;;  %v711_v32 = vmul.f32 1.442695, %v691_v30 }
 0x30c   :  { %v666_v21 = vpop.xlane.xlu0 %665  ;;  %v668_v35 = vpop.xlane.xlu1 %667 }
 0x30d   :  { %2741 = vpow2.f32 %v707_v55  ;;  %v693_v41 = vsub.f32 %v3393_v9, %v668_v35  ;;  %v692_v19 = vsub.f32 %v3391_v4, %v666_v21 }
 0x30e   :  { %v3487_v26 = vpop.eup %2735  ;;  %2743 = vpow2.f32 %v711_v32 }
 0x30f   :  { %v3489_v3 = vpop.eup %2737  ;;  %737 = vadd.xlane.f32.xlu1 %v3487_v26  ;;  %v715_v6 = vmul.f32 1.442695, %v693_v41  ;;  %v713_v0 = vmul.f32 1.442695, %v692_v19 }
 0x310   :  { %v670_v31 = vpop.xlane.xlu0 %669  ;;  %735 = vadd.xlane.f32.xlu0 %v3489_v3  ;;  %v672_v23 = vpop.xlane.xlu1 %671 }
 0x311   :  { %v694_v44 = vsub.f32 %v3397_v22, %v670_v31  ;;  %v695_v48 = vsub.f32 %v3399_v54, %v672_v23 }
 0x313   :  { %v3495_v49 = vpop.eup %2739  ;;  %v717_v1 = vmul.f32 1.442695, %v694_v44  ;;  %v719_v15 = vmul.f32 1.442695, %v695_v48 }
 0x314   :  { %741 = vadd.xlane.f32.xlu0 %v3495_v49  ;;  %v674_v22 = vpop.xlane.xlu0 %673  ;;  %v676_v59 = vpop.xlane.xlu1 %675 }
 0x315   :  { %2745 = vpow2.f32 %v717_v1  ;;  %v697_v52 = vsub.f32 %v3405_v38, %v676_v59 }
 0x316   :  { %2747 = vpow2.f32 %v715_v6 }
 0x317   :  { %v3498_v14 = vpop.eup %2741  ;;  %2749 = vpow2.f32 %v713_v0  ;;  %v723_v24 = vmul.f32 1.442695, %v697_v52 }
 0x318   :  { %739 = vadd.xlane.f32.xlu0 %v3498_v14  ;;  %v3501_v11 = vpop.eup %2743  ;;  %v678_v53 = vpop.xlane.xlu0 %677  ;;  %2751 = vpow2.f32 %v719_v15 }
 0x319   :  { %v680_v10 = vpop.xlane.xlu1 %679  ;;  %2753 = vpow2.f32 %v723_v24  ;;  %v698_v23 = vsub.f32 %v3409_v40, %v678_v53 }
 0x31a   :  { %v699_v50 = vsub.f32 %v3411_v47, %v680_v10  ;;  %v696_v47 = vsub.f32 %v3403_v7, %v674_v22 }
 0x31b   :  { %v725_v0 = vmul.f32 1.442695, %v698_v23 }
 0x31c   :  { %743 = vadd.xlane.f32.xlu0 %v3501_v11  ;;  %v682_v58 = vpop.xlane.xlu0 %681  ;;  %v727_v30 = vmul.f32 1.442695, %v699_v50  ;;  %v721_v6 = vmul.f32 1.442695, %v696_v47 }
 0x31d   :  { %v684_v27 = vpop.xlane.xlu1 %683  ;;  %v700_v48 = vsub.f32 %v3415_v17, %v682_v58 }
 0x31e   :  { %v701_v54 = vsub.f32 %v3417_v43, %v684_v27  ;;  %2755 = vpow2.f32 %v727_v30 }
 0x31f   :  { %v3504_v51 = vpop.eup %2745  ;;  %v729_v52 = vmul.f32 1.442695, %v700_v48 }
 0x320   :  { %749 = vadd.xlane.f32.xlu0 %v3504_v51  ;;  %2726 = vrot.lane.b32.xlu1 %v3185_v2, %s2864_s2  ;;  %v3509_v9 = vpop.eup %2747  ;;  %v686_v2 = vpop.xlane.xlu0 %685 }
 0x321   :  { %v3519_v21 = vpop.eup %2749 }
 0x322   :  { %v3526_v31 = vpop.eup %2751 }
 0x323   :  { %v3533_v19 = vpop.eup %2753 }
 0x324   :  { %747 = vadd.xlane.f32.xlu0 %v3509_v9 }
 0x33a   :  { %2731 = vrot.lane.b32.xlu0 %v3197_v12, %s2864_s2  ;;  %v731_v12 = vmul.f32 1.442695, %v701_v54 }
 0x33c   :  { %2757 = vpow2.f32 %v731_v12 }
 0x340   :  { %v1364_v4 = vpop.xlane.xlu0 %1363 }
 0x341   :  { %v1362_v55 = vpop.xlane.xlu1 %1361  ;;  %v1394_v30 = vsub.f32 %v3424_v20, %v1364_v4 }
 0x342   :  { %v1393_v38 = vsub.f32 %v3426_v25, %v1362_v55 }
 0x344   :  { %v3521_v32 = vpop.xlane.xlu0 %1367  ;;  %745 = vadd.xlane.f32.xlu1 %v3519_v21  ;;  %v1409_v43 = vmul.f32 1.442695, %v1393_v38 }
 0x345   :  { %v1366_v35 = vpop.xlane.xlu1 %1365  ;;  %v1396_v38 = vsub.f32 %v3430_v57, %v3521_v32 }
 0x346   :  { %v1395_v44 = vsub.f32 %v3432_v29, %v1366_v35  ;;  %2759 = vpow2.f32 %v1409_v43  ;;  %v3540_v29 = vpop.eup %2755 }
 0x347   :  { %2761 = vpow2.f32 %v721_v6  ;;  %v3547_v24 = vpop.eup %2757 }
 0x348   :  { %v3528_v41 = vpop.xlane.xlu0 %1371  ;;  %751 = vadd.xlane.f32.xlu1 %v3526_v31  ;;  %v1413_v7 = vmul.f32 1.442695, %v1395_v44 }
 0x349   :  { %v1370_v1 = vpop.xlane.xlu1 %1369  ;;  %v1398_v44 = vsub.f32 %v3436_v63, %v3528_v41 }
 0x34a   :  { %v1397_v22 = vsub.f32 %v3438_v62, %v1370_v1  ;;  %2763 = vpow2.f32 %v1413_v7  ;;  %v702_v62 = vsub.f32 %v3421_v45, %v686_v2 }
 0x34b   :  { %2765 = vpow2.f32 %v725_v0 }
 0x34c   :  { %v3535_v25 = vpop.xlane.xlu0 %1375  ;;  %755 = vadd.xlane.f32.xlu1 %v3533_v19  ;;  %v1417_v40 = vmul.f32 1.442695, %v1397_v22  ;;  %v733_v27 = vmul.f32 1.442695, %v702_v62 }
 0x34d   :  { %v1374_v59 = vpop.xlane.xlu1 %1373  ;;  %v1400_v7 = vsub.f32 %v3442_v34, %v3535_v25 }
 0x34e   :  { %v1399_v53 = vsub.f32 %v3444_v60, %v1374_v59  ;;  %2767 = vpow2.f32 %v1417_v40 }
 0x34f   :  { %2769 = vpow2.f32 %v729_v52 }
 0x350   :  { %v3542_v10 = vpop.xlane.xlu0 %1379  ;;  %759 = vadd.xlane.f32.xlu1 %v3540_v29  ;;  %v1421_v17 = vmul.f32 1.442695, %v1399_v53  ;;  %v3552_v60 = vpop.eup %2759 }
 0x351   :  { %v1378_v15 = vpop.xlane.xlu1 %1377  ;;  %v3554_v55 = vpop.eup %2761  ;;  %v1402_v48 = vsub.f32 %v3448_v37, %v3542_v10 }
 0x352   :  { %v1401_v58 = vsub.f32 %v3450_v42, %v1378_v15  ;;  %2771 = vpow2.f32 %v1421_v17  ;;  %v1411_v42 = vmul.f32 1.442695, %v1394_v30 }
 0x353   :  { %2773 = vpow2.f32 %v733_v27 }
 0x354   :  { %763 = vadd.xlane.f32.xlu1 %v3547_v24  ;;  %v1384_v54 = vpop.xlane.xlu0 %1383  ;;  %v1425_v45 = vmul.f32 1.442695, %v1401_v58  ;;  %v3561_v20 = vpop.eup %2763 }
 0x355   :  { %v1382_v50 = vpop.xlane.xlu1 %1381  ;;  %v3563_v4 = vpop.eup %2765  ;;  %v1404_v53 = vsub.f32 %v3454_v8, %v1384_v54 }
 0x356   :  { %v1403_v2 = vsub.f32 %v3456_v13, %v1382_v50  ;;  %2775 = vpow2.f32 %v1425_v45  ;;  %v1415_v13 = vmul.f32 1.442695, %v1396_v38 }
 0x357   :  { %2777 = vpow2.f32 %v1411_v42  ;;  %v1431_v37 = vmul.f32 1.442695, %v1404_v53  ;;  %v2713_v53 = vunpack.i.l.bf16 %v3476_v39 }
 0x358   :  { %1441 = vadd.xlane.f32.xlu1 %v3552_v60  ;;  %v1388_v35 = vpop.xlane.xlu0 %1387  ;;  %v1429_v47 = vmul.f32 1.442695, %v1403_v2  ;;  %v3570_v57 = vpop.eup %2767 }
 0x359   :  { %v1386_v12 = vpop.xlane.xlu1 %1385  ;;  %753 = vadd.xlane.f32.xlu0 %v3554_v55  ;;  %v3572_v32 = vpop.eup %2769  ;;  %v1406_v10 = vsub.f32 %v3460_v46, %v1388_v35  ;;  %v815_v35 = vld [vmem:[%s3896_s3] sm:$0xff] }
 0x35a   :  { %v1405_v43 = vsub.f32 %v3462_v18, %v1386_v12  ;;  %2779 = vpow2.f32 %v1429_v47  ;;  %v1419_v18 = vmul.f32 1.442695, %v1398_v44  ;;  %vm831_vm2 = vcmp.ge.u32.totalorder %v815_v35, 429496730 }
 0x35b   :  { %2781 = vpow2.f32 %v1415_v13  ;;  %v1435_v8 = vmul.f32 1.442695, %v1406_v10  ;;  %v816_v13 = vld [vmem:[%s3896_s3 + $0x8] sm:$0xff]  ;;  %v2724_v35 = vunpack.i.h.bf16 %v3480_v61 }
 0x35c   :  { %1445 = vadd.xlane.f32.xlu1 %v3561_v20  ;;  %v1433_v6 = vmul.f32 1.442695, %v1405_v43  ;;  %v1392_v22 = vpop.xlane.xlu0 %1391  ;;  %v3579_v63 = vpop.eup %2771  ;;  %vm832_vm3 = vcmp.ge.u32.totalorder %v816_v13, 429496730 }
 0x35d   :  { %757 = vadd.xlane.f32.xlu0 %v3563_v4  ;;  %v1390_v1 = vpop.xlane.xlu1 %1389  ;;  %v3581_v41 = vpop.eup %2773  ;;  %v1408_v59 = vsub.f32 %v3466_v16, %v1392_v22  ;;  %v1427_v16 = vmul.f32 1.442695, %v1402_v48  ;;  %v818_v48 = vld [vmem:[%s3896_s3 + $0x18] sm:$0xff] }
 0x35e   :  { %v1407_v23 = vsub.f32 %v3468_v28, %v1390_v1  ;;  %2783 = vpow2.f32 %v1433_v6  ;;  %v1423_v28 = vmul.f32 1.442695, %v1400_v7  ;;  %v2704_v6 = vunpack.i.h.bf16 %v3472_v33 }
 0x35f   :  { %2785 = vpow2.f32 %v1419_v18  ;;  %v1439_v25 = vmul.f32 1.442695, %v1408_v59  ;;  %vm834_vm5 = vcmp.ge.u32.totalorder %v818_v48, 429496730 }
 0x360   :  { %1449 = vadd.xlane.f32.xlu1 %v3570_v57  ;;  %v1437_v0 = vmul.f32 1.442695, %v1407_v23  ;;  %v3588_v40 = vpop.eup %2775  ;;  %v2703_v23 = vunpack.i.l.bf16 %v3472_v33 }
 0x361   :  { %761 = vadd.xlane.f32.xlu0 %v3572_v32  ;;  %v3590_v34 = vpop.eup %2777 }
 0x362   :  { %2787 = vpow2.f32 %v1437_v0  ;;  %v2545_v59 = vpack.c.bf16 %v2704_v6, %v2703_v23  ;;  %v2708_v0 = vunpack.i.l.bf16 %v3474_v36 }
 0x363   :  { %2789 = vpow2.f32 %v1423_v28 }
 0x364   :  { %1453 = vadd.xlane.f32.xlu1 %v3579_v63  ;;  %v3595_v15 = vpop.eup %2779  ;;  %2791 = vpow2.f32 %v1439_v25 }
 0x365   :  { %765 = vadd.xlane.f32.xlu0 %v3581_v41  ;;  %v3597_v52 = vpop.eup %2781  ;;  %2793 = vpow2.f32 %v1427_v16 }
 0x366   :  { %2795 = vpow2.f32 %v1431_v37 }
 0x367   :  { %2797 = vpow2.f32 %v1435_v8 }
 0x368   :  { %1457 = vadd.xlane.f32.xlu1 %v3588_v40  ;;  %v3602_v62 = vpop.eup %2783 }
 0x369   :  { %1443 = vadd.xlane.f32.xlu0 %v3590_v34  ;;  %v3604_v17 = vpop.eup %2785 }
 0x36c   :  { %1461 = vadd.xlane.f32.xlu1 %v3595_v15  ;;  %v3608_v58 = vpop.eup %2787 }
 0x36d   :  { %1447 = vadd.xlane.f32.xlu0 %v3597_v52  ;;  %v3610_v50 = vpop.eup %2789 }
 0x36e   :  { %v3614_v46 = vpop.eup %2791 }
 0x36f   :  { %v3616_v27 = vpop.eup %2793 }
 0x370   :  { %1465 = vadd.xlane.f32.xlu1 %v3602_v62  ;;  %v3620_v30 = vpop.eup %2795 }
 0x371   :  { %1451 = vadd.xlane.f32.xlu0 %v3604_v17  ;;  %v3623_v54 = vpop.eup %2797 }
 0x374   :  { %1469 = vadd.xlane.f32.xlu1 %v3608_v58 }
 0x375   :  { %1455 = vadd.xlane.f32.xlu0 %v3610_v50 }
 0x378   :  { %1471 = vadd.xlane.f32.xlu1 %v3614_v46 }
 0x379   :  { %1459 = vadd.xlane.f32.xlu0 %v3616_v27 }
 0x37d   :  { %1463 = vadd.xlane.f32.xlu0 %v3620_v30 }
 0x381   :  { %1467 = vadd.xlane.f32.xlu0 %v3623_v54 }
 0x39c   :  { %v738_v45 = vpop.xlane.xlu1 %737 }
 0x39d   :  { %2799 = vrcp.f32 %v738_v45  ;;  %v736_v2 = vpop.xlane.xlu0 %735 }
 0x39e   :  { %2801 = vrcp.f32 %v736_v2  ;;  %v2719_v2 = vunpack.i.h.bf16 %v3478_v56 }
 0x3a1   :  { %v742_v12 = vpop.xlane.xlu0 %741 }
 0x3a2   :  { %2803 = vrcp.f32 %v742_v12 }
 0x3a5   :  { %v740_v42 = vpop.xlane.xlu0 %739 }
 0x3a6   :  { %2805 = vrcp.f32 %v740_v42 }
 0x3a7   :  { %v2800_v38 = vpop.eup %2799 }
 0x3a8   :  { %v2802_v47 = vpop.eup %2801  ;;  %v800_v43 = vmul.f32 %v2800_v38, %v3487_v26  ;;  %v2709_v26 = vunpack.i.h.bf16 %v3474_v36  ;;  %v2714_v36 = vunpack.i.h.bf16 %v3476_v39  ;;  %v2718_v39 = vunpack.i.l.bf16 %v3478_v56 }
 0x3a9   :  { %v744_v44 = vpop.xlane.xlu0 %743  ;;  %v799_v1 = vmul.f32 %v2802_v47, %v3489_v3  ;;  %v817_v3 = vld [vmem:[%s3896_s3 + $0x10] sm:$0xff]  ;;  %v2723_v47 = vunpack.i.l.bf16 %v3480_v61 }
 0x3aa   :  { %2807 = vrcp.f32 %v744_v44  ;;  %v848_v7 = vmul.f32 1.1111112, %v800_v43  ;;  %v2549_v16 = vpack.c.bf16 %v2709_v26, %v2708_v0  ;;  %vm833_vm4 = vcmp.ge.u32.totalorder %v817_v3, 429496730  ;;  %v2727_v43 = vpop.permute.xlu1 %2726  ;;  %v820_v0 = vld [vmem:[%s3896_s3 + $0x28] sm:$0xff] }
 0x3ab   :  { %v847_v18 = vmul.f32 1.1111112, %v799_v1  ;;  %v2553_v45 = vpack.c.bf16 %v2714_v36, %v2713_v53  ;;  %v2557_v38 = vpack.c.bf16 %v2719_v2, %v2718_v39  ;;  %v2729_v13 = vunpack.i.h.bf16 %v2727_v43  ;;  %v822_v53 = vld [vmem:[%s3896_s3 + $0x38] sm:$0xff] }
 0x3ac   :  { %v2804_v22 = vpop.eup %2803  ;;  %v2728_v44 = vunpack.i.l.bf16 %v2727_v43  ;;  %vm836_vm7 = vcmp.ge.u32.totalorder %v820_v0, 429496730  ;;  %vm838_vm9 = vcmp.ge.u32.totalorder %v822_v53, 429496730  ;;  %v825_v43 = vld [vmem:[%s3896_s3 + $0x50] sm:$0xff] }
 0x3ad   :  { %2269 = vmatprep.mubr.msk.f32.mxu0 %vm831_vm2, %v847_v18  ;;  %v802_v28 = vmul.f32 %v2804_v22, %v3495_v49  ;;  %v819_v49 = vld [vmem:[%s3896_s3 + $0x20] sm:$0xff]  ;;  %vm841_vm12 = vcmp.ge.u32.totalorder %v825_v43, 429496730 }
 0x3ae   :  { %2270 = vmatmul.mubr.msk.f32.vlgmr.msra.gmra.mrb[32].mxu0 %vm832_vm3, %v848_v7  ;;  %vm835_vm6 = vcmp.ge.u32.totalorder %v819_v49, 429496730  ;;  %v2565_v56 = vpack.c.bf16 %v2729_v13, %v2728_v44 }
 0x3af   :  { %2544 = vmatpush3.bf16.msra.mxu0 %v3321_v5  ;;  %v750_v5 = vpop.xlane.xlu0 %749  ;;  %v850_v8 = vmul.f32 1.1111112, %v802_v28  ;;  %v821_v28 = vld [vmem:[%s3896_s3 + $0x30] sm:$0xff] }
 0x3b0   :  { %v2806_v33 = vpop.eup %2805  ;;  %2546 = vmatprep.subr.bf16.mxu0 %v2545_v59  ;;  %vm837_vm8 = vcmp.ge.u32.totalorder %v821_v28, 429496730  ;;  %v829_v28 = vld [vmem:[%s3896_s3 + $0x70] sm:$0xff] }
 0x3b1   :  { %v801_v25 = vmul.f32 %v2806_v33, %v3498_v14  ;;  %vm845_vm1 = vcmp.ge.u32.totalorder %v829_v28, 429496730 }
 0x3b3   :  { %2548 = vmatpush3.bf16.msra.mxu0 %v2545_v59  ;;  %v849_v37 = vmul.f32 1.1111112, %v801_v25  ;;  %v748_v42 = vpop.xlane.xlu0 %747 }
 0x3b4   :  { %v2808_v10 = vpop.eup %2807  ;;  %2550 = vmatprep.subr.bf16.mxu0 %v2549_v16  ;;  %2809 = vrcp.f32 %v748_v42 }
 0x3b5   :  { %2272 = vmatprep.mubr.msk.f32.mxu0 %vm833_vm4, %v849_v37  ;;  %v803_v14 = vmul.f32 %v2808_v10, %v3501_v11  ;;  %v2561_v11 = vpack.c.bf16 %v2724_v35, %v2723_v47  ;;  %2811 = vrcp.f32 %v750_v5 }
 0x3b6   :  { %2273 = vmatmul.mubr.msk.f32.gmra.mrb[34].mxu0 %vm834_vm5, %v850_v8 }
 0x3b7   :  { %2552 = vmatpush3.bf16.msra.mxu0 %v2549_v16  ;;  %v851_v12 = vmul.f32 1.1111112, %v803_v14  ;;  %v2732_v1 = vpop.permute.xlu0 %2731 }
 0x3b8   :  { %2554 = vmatprep.subr.bf16.mxu0 %v2553_v45  ;;  %v2734_v6 = vunpack.i.h.bf16 %v2732_v1  ;;  %v2733_v23 = vunpack.i.l.bf16 %v2732_v1 }
 0x3b9   :  { %2275 = vmatprep.mubr.msk.f32.mxu0 %vm835_vm6, %v851_v12 }
 0x3ba   :  { %v2569_v18 = vpack.c.bf16 %v2734_v6, %v2733_v23 }
 0x3bb   :  { %2556 = vmatpush3.bf16.msra.mxu0 %v2553_v45 }
 0x3bc   :  { %2558 = vmatprep.subr.bf16.mxu0 %v2557_v38 }
 0x3be   :  { %v2810_v22 = vpop.eup %2809 }
 0x3bf   :  { %2560 = vmatpush3.bf16.msra.mxu0 %v2557_v38  ;;  %v2812_v26 = vpop.eup %2811  ;;  %v805_v33 = vmul.f32 %v2810_v22, %v3509_v9  ;;  %v823_v9 = vld [vmem:[%s3896_s3 + $0x40] sm:$0xff] }
 0x3c0   :  { %2562 = vmatprep.subr.bf16.mxu0 %v2561_v11  ;;  %v806_v36 = vmul.f32 %v2812_v26, %v3504_v51  ;;  %vm839_vm10 = vcmp.ge.u32.totalorder %v823_v9, 429496730  ;;  %v828_v26 = vld [vmem:[%s3896_s3 + $0x68] sm:$0xff] }
 0x3c1   :  { %v853_v37 = vmul.f32 1.1111112, %v805_v33  ;;  %vm844_vm15 = vcmp.ge.u32.totalorder %v828_v26, 429496730 }
 0x3c3   :  { %2564 = vmatpush3.bf16.msra.mxu0 %v2561_v11 }
 0x3c4   :  { %2566 = vmatprep.subr.bf16.mxu0 %v2565_v56 }
 0x3c7   :  { %2568 = vmatpush3.bf16.msra.mxu0 %v2565_v56  ;;  %v826_v56 = vld [vmem:[%s3896_s3 + $0x58] sm:$0xff] }
 0x3c8   :  { %2570 = vmatprep.subr.bf16.mxu0 %v2569_v18  ;;  %vm842_vm13 = vcmp.ge.u32.totalorder %v826_v56, 429496730 }
 0x3cb   :  { %2572 = vmatpush3.bf16.msra.mxu0 %v2569_v18 }
 0x3d1   :  { %v746_v61 = vpop.xlane.xlu1 %745 }
 0x3d2   :  { %2813 = vrcp.f32 %v746_v61  ;;  %v827_v61 = vld [vmem:[%s3896_s3 + $0x60] sm:$0xff] }
 0x3d3   :  { %vm843_vm14 = vcmp.ge.u32.totalorder %v827_v61, 429496730 }
 0x3d5   :  { %v752_v7 = vpop.xlane.xlu1 %751 }
 0x3d6   :  { %2815 = vrcp.f32 %v752_v7 }
 0x3d9   :  { %v756_v59 = vpop.xlane.xlu1 %755 }
 0x3da   :  { %2817 = vrcp.f32 %v756_v59 }
 0x3dc   :  { %v2814_v3 = vpop.eup %2813 }
 0x3dd   :  { %v760_v48 = vpop.xlane.xlu1 %759  ;;  %v804_v25 = vmul.f32 %v2814_v3, %v3519_v21  ;;  %v854_v21 = vmul.f32 1.1111112, %v806_v36  ;;  %v830_v36 = vld [vmem:[%s3896_s3 + $0x78] sm:$0xff] }
 0x3de   :  { %vm846_vm2 = vcmp.ge.u32.totalorder %v830_v36, 429496730 }
 0x3df   :  { %v852_v16 = vmul.f32 1.1111112, %v804_v25 }
 0x3e0   :  { %v2816_v5 = vpop.eup %2815 }
 0x3e1   :  { %2276 = vmatmul.mubr.msk.f32.gmra.mrb[36].mxu0 %vm836_vm7, %v852_v16  ;;  %v764_v49 = vpop.xlane.xlu1 %763  ;;  %v807_v10 = vmul.f32 %v2816_v5, %v3526_v31  ;;  %v824_v31 = vld [vmem:[%s3896_s3 + $0x48] sm:$0xff] }
 0x3e2   :  { %2278 = vmatprep.mubr.msk.f32.mxu0 %vm837_vm8, %v853_v37  ;;  %vm840_vm11 = vcmp.ge.u32.totalorder %v824_v31, 429496730  ;;  %v1913_v37 = vld [vmem:[%s3896_s3 + $0x80] sm:$0xff] }
 0x3e3   :  { %v855_v8 = vmul.f32 1.1111112, %v807_v10  ;;  %vm1538_vm3 = vcmp.ge.u32.totalorder %v1913_v37, 429496730 }
 0x3e4   :  { %v2818_v12 = vpop.eup %2817 }
 0x3e5   :  { %2279 = vmatmul.mubr.msk.f32.gmra.mrb[38].mxu0 %vm838_vm9, %v854_v21  ;;  %v1442_v51 = vpop.xlane.xlu1 %1441  ;;  %v809_v47 = vmul.f32 %v2818_v12, %v3533_v19 }
 0x3e6   :  { %v754_v14 = vpop.xlane.xlu0 %753  ;;  %2281 = vmatprep.mubr.msk.f32.mxu0 %vm839_vm10, %v855_v8 }
 0x3e7   :  { %2819 = vrcp.f32 %v754_v14  ;;  %v857_v19 = vmul.f32 1.1111112, %v809_v47 }
 0x3e8   :  { %2821 = vrcp.f32 %v760_v48 }
 0x3e9   :  { %v1446_v45 = vpop.xlane.xlu1 %1445 }
 0x3ea   :  { %v758_v2 = vpop.xlane.xlu0 %757 }
 0x3eb   :  { %2823 = vrcp.f32 %v758_v2 }
 0x3ec   :  { %2825 = vrcp.f32 %v764_v49 }
 0x3ed   :  { %v1450_v39 = vpop.xlane.xlu1 %1449 }
 0x3ee   :  { %v762_v42 = vpop.xlane.xlu0 %761 }
 0x3ef   :  { %2827 = vrcp.f32 %v762_v42  ;;  %v1916_v42 = vld [vmem:[%s3896_s3 + $0x98] sm:$0xff] }
 0x3f0   :  { %2829 = vrcp.f32 %v1442_v51  ;;  %vm1541_vm6 = vcmp.ge.u32.totalorder %v1916_v42, 429496730 }
 0x3f1   :  { %v2820_v38 = vpop.eup %2819  ;;  %v1454_v35 = vpop.xlane.xlu1 %1453 }
 0x3f2   :  { %v2822_v11 = vpop.eup %2821  ;;  %v766_v13 = vpop.xlane.xlu0 %765  ;;  %v808_v44 = vmul.f32 %v2820_v38, %v3554_v55 }
 0x3f3   :  { %2831 = vrcp.f32 %v766_v13  ;;  %v811_v18 = vmul.f32 %v2822_v11, %v3540_v29 }
 0x3f4   :  { %2833 = vrcp.f32 %v1446_v45  ;;  %v856_v1 = vmul.f32 1.1111112, %v808_v44  ;;  %v1915_v45 = vld [vmem:[%s3896_s3 + $0x90] sm:$0xff]  ;;  %v1918_v44 = vld [vmem:[%s3896_s3 + $0xa8] sm:$0xff] }
 0x3f5   :  { %v2824_v6 = vpop.eup %2823  ;;  %v1458_v23 = vpop.xlane.xlu1 %1457  ;;  %v859_v3 = vmul.f32 1.1111112, %v811_v18  ;;  %vm1540_vm5 = vcmp.ge.u32.totalorder %v1915_v45, 429496730  ;;  %vm1543_vm8 = vcmp.ge.u32.totalorder %v1918_v44, 429496730 }
 0x3f6   :  { %v2826_v7 = vpop.eup %2825  ;;  %v1444_v55 = vpop.xlane.xlu0 %1443  ;;  %2282 = vmatmul.mubr.msk.f32.gmra.mrb[40].mxu0 %vm840_vm11, %v856_v1  ;;  %v810_v22 = vmul.f32 %v2824_v6, %v3563_v4  ;;  %v1919_v6 = vld [vmem:[%s3896_s3 + $0xb0] sm:$0xff] }
 0x3f7   :  { %2835 = vrcp.f32 %v1444_v55  ;;  %2284 = vmatprep.mubr.msk.f32.mxu0 %vm841_vm12, %v857_v19  ;;  %v813_v33 = vmul.f32 %v2826_v7, %v3547_v24  ;;  %vm1544_vm9 = vcmp.ge.u32.totalorder %v1919_v6, 429496730 }
 0x3f8   :  { %2837 = vrcp.f32 %v1450_v39  ;;  %v858_v59 = vmul.f32 1.1111112, %v810_v22 }
 0x3f9   :  { %v2828_v29 = vpop.eup %2827  ;;  %v1462_v0 = vpop.xlane.xlu1 %1461  ;;  %v861_v53 = vmul.f32 1.1111112, %v813_v33 }
 0x3fa   :  { %v2830_v4 = vpop.eup %2829  ;;  %v1448_v48 = vpop.xlane.xlu0 %1447  ;;  %2285 = vmatmul.mubr.msk.f32.gmra.mrb[42].mxu0 %vm842_vm13, %v858_v59  ;;  %v812_v25 = vmul.f32 %v2828_v29, %v3572_v32  ;;  %v1921_v59 = vld [vmem:[%s3896_s3 + $0xc0] sm:$0xff] }
 0x3fb   :  { %2839 = vrcp.f32 %v1448_v48  ;;  %2287 = vmatprep.mubr.msk.f32.mxu0 %vm843_vm14, %v859_v3  ;;  %v1505_v5 = vmul.f32 %v2830_v4, %v3552_v60  ;;  %v1914_v60 = vld [vmem:[%s3896_s3 + $0x88] sm:$0xff]  ;;  %vm1546_vm11 = vcmp.ge.u32.totalorder %v1921_v59, 429496730  ;;  %v1923_v4 = vld [vmem:[%s3896_s3 + $0xd0] sm:$0xff] }
 0x3fc   :  { %2841 = vrcp.f32 %v1454_v35  ;;  %v860_v16 = vmul.f32 1.1111112, %v812_v25  ;;  %vm1539_vm4 = vcmp.ge.u32.totalorder %v1914_v60, 429496730  ;;  %v1922_v3 = vld [vmem:[%s3896_s3 + $0xc8] sm:$0xff] }
 0x3fd   :  { %v2832_v24 = vpop.eup %2831  ;;  %v1466_v10 = vpop.xlane.xlu1 %1465  ;;  %v1554_v51 = vmul.f32 1.1111112, %v1505_v5  ;;  %vm1547_vm12 = vcmp.ge.u32.totalorder %v1922_v3, 429496730  ;;  %vm1548_vm13 = vcmp.ge.u32.totalorder %v1923_v4, 429496730 }
 0x3fe   :  { %v2834_v9 = vpop.eup %2833  ;;  %v1452_v32 = vpop.xlane.xlu0 %1451  ;;  %2288 = vmatmul.mubr.msk.f32.gmra.mrb[44].mxu0 %vm844_vm15, %v860_v16  ;;  %v814_v49 = vmul.f32 %v2832_v24, %v3581_v41  ;;  %v1924_v16 = vld [vmem:[%s3896_s3 + $0xd8] sm:$0xff] }
 0x3ff   :  { %2843 = vrcp.f32 %v1452_v32  ;;  %2290 = vmatprep.mubr.msk.f32.mxu0 %vm845_vm1, %v861_v53  ;;  %v1507_v14 = vmul.f32 %v2834_v9, %v3561_v20  ;;  %v1925_v53 = vld [vmem:[%s3896_s3 + $0xe0] sm:$0xff]  ;;  %vm1549_vm14 = vcmp.ge.u32.totalorder %v1924_v16, 429496730  ;;  %v1926_v32 = vld [vmem:[%s3896_s3 + $0xe8] sm:$0xff] }
 0x400   :  { %2845 = vrcp.f32 %v1458_v23  ;;  %v862_v21 = vmul.f32 1.1111112, %v814_v49  ;;  %vm1550_vm15 = vcmp.ge.u32.totalorder %v1925_v53, 429496730  ;;  %vm1551_vm1 = vcmp.ge.u32.totalorder %v1926_v32, 429496730 }
 0x401   :  { %v2836_v8 = vpop.eup %2835  ;;  %v1470_v31 = vpop.xlane.xlu1 %1469  ;;  %v1556_v38 = vmul.f32 1.1111112, %v1507_v14 }
 0x402   :  { %v2838_v41 = vpop.eup %2837  ;;  %v1506_v2 = vmul.f32 %v2836_v8, %v3590_v34  ;;  %v1456_v39 = vpop.xlane.xlu0 %1455  ;;  %2291 = vmatmul.mubr.msk.f32.gmra.mrb[46].mxu0 %vm846_vm2, %v862_v21  ;;  %v1917_v34 = vld [vmem:[%s3896_s3 + $0xa0] sm:$0xff]  ;;  %v1927_v21 = vld [vmem:[%s3896_s3 + $0xf0] sm:$0xff] }
 0x403   :  { %2847 = vrcp.f32 %v1456_v39  ;;  %2381 = vmatprep.mubr.msk.f32.mxu0 %vm1538_vm3, %v1554_v51  ;;  %v1509_v35 = vmul.f32 %v2838_v41, %v3570_v57  ;;  %vm1542_vm7 = vcmp.ge.u32.totalorder %v1917_v34, 429496730  ;;  %vm1552_vm2 = vcmp.ge.u32.totalorder %v1927_v21, 429496730  ;;  %v1928_v51 = vld [vmem:[%s3896_s3 + $0xf8] sm:$0xff] }
 0x404   :  { %v1555_v12 = vmul.f32 1.1111112, %v1506_v2  ;;  %2849 = vrcp.f32 %v1462_v0  ;;  %vm1553_vm3 = vcmp.ge.u32.totalorder %v1928_v51, 429496730 }
 0x405   :  { %v2840_v20 = vpop.eup %2839  ;;  %v1558_v1 = vmul.f32 1.1111112, %v1509_v35  ;;  %v1472_v18 = vpop.xlane.xlu1 %1471 }
 0x406   :  { %v2842_v47 = vpop.eup %2841  ;;  %v1460_v43 = vpop.xlane.xlu0 %1459  ;;  %2382 = vmatmul.mubr.msk.f32.vlgmr.msra.gmra.mrb[48].mxu0 %vm1539_vm4, %v1555_v12  ;;  %v1508_v11 = vmul.f32 %v2840_v20, %v3597_v52 }
 0x407   :  { %2851 = vrcp.f32 %v1460_v43  ;;  %2384 = vmatprep.mubr.msk.f32.mxu0 %vm1540_vm5, %v1556_v38  ;;  %v1511_v56 = vmul.f32 %v2842_v47, %v3579_v63  ;;  %v1920_v63 = vld [vmem:[%s3896_s3 + $0xb8] sm:$0xff] }
 0x408   :  { %2853 = vrcp.f32 %v1466_v10  ;;  %v1557_v13 = vmul.f32 1.1111112, %v1508_v11  ;;  %vm1545_vm10 = vcmp.ge.u32.totalorder %v1920_v63, 429496730 }
 0x409   :  { %v2844_v57 = vpop.eup %2843  ;;  %v1560_v55 = vmul.f32 1.1111112, %v1511_v56 }
 0x40a   :  { %v2846_v23 = vpop.eup %2845  ;;  %v1464_v52 = vpop.xlane.xlu0 %1463  ;;  %2385 = vmatmul.mubr.msk.f32.gmra.mrb[50].mxu0 %vm1541_vm6, %v1557_v13  ;;  %v1510_v19 = vmul.f32 %v2844_v57, %v3604_v17 }
 0x40b   :  { %2855 = vrcp.f32 %v1464_v52  ;;  %2387 = vmatprep.mubr.msk.f32.mxu0 %vm1542_vm7, %v1558_v1  ;;  %v1513_v22 = vmul.f32 %v2846_v23, %v3588_v40 }
 0x40c   :  { %2857 = vrcp.f32 %v1470_v31  ;;  %v1559_v61 = vmul.f32 1.1111112, %v1510_v19 }
 0x40d   :  { %v2848_v7 = vpop.eup %2847  ;;  %2859 = vrcp.f32 %v1472_v18  ;;  %v1562_v33 = vmul.f32 1.1111112, %v1513_v22 }
 0x40e   :  { %v2850_v17 = vpop.eup %2849  ;;  %v1468_v26 = vpop.xlane.xlu0 %1467  ;;  %2388 = vmatmul.mubr.msk.f32.gmra.mrb[52].mxu0 %vm1543_vm8, %v1559_v61  ;;  %v1512_v29 = vmul.f32 %v2848_v7, %v3610_v50 }
 0x40f   :  { %2861 = vrcp.f32 %v1468_v26  ;;  %2390 = vmatprep.mubr.msk.f32.mxu0 %vm1544_vm9, %v1560_v55  ;;  %v1515_v28 = vmul.f32 %v2850_v17, %v3595_v15 }
 0x410   :  { %v1561_v0 = vmul.f32 1.1111112, %v1512_v29 }
 0x411   :  { %v2852_v40 = vpop.eup %2851  ;;  %v1564_v24 = vmul.f32 1.1111112, %v1515_v28 }
 0x412   :  { %v2854_v48 = vpop.eup %2853  ;;  %2391 = vmatmul.mubr.msk.f32.gmra.mrb[54].mxu0 %vm1545_vm10, %v1561_v0  ;;  %v1514_v50 = vmul.f32 %v2852_v40, %v3616_v27 }
 0x413   :  { %2393 = vmatprep.mubr.msk.f32.mxu0 %vm1546_vm11, %v1562_v33  ;;  %v1517_v15 = vmul.f32 %v2854_v48, %v3602_v62 }
 0x414   :  { %v1563_v25 = vmul.f32 1.1111112, %v1514_v50 }
 0x415   :  { %v2856_v36 = vpop.eup %2855  ;;  %v1566_v10 = vmul.f32 1.1111112, %v1517_v15 }
 0x416   :  { %v2858_v5 = vpop.eup %2857  ;;  %2394 = vmatmul.mubr.msk.f32.gmra.mrb[56].mxu0 %vm1547_vm12, %v1563_v25  ;;  %v1516_v27 = vmul.f32 %v2856_v36, %v3620_v30 }
 0x417   :  { %2396 = vmatprep.mubr.msk.f32.mxu0 %vm1548_vm13, %v1564_v24  ;;  %v2860_v37 = vpop.eup %2859  ;;  %v1519_v62 = vmul.f32 %v2858_v5, %v3608_v58 }
 0x418   :  { %v1565_v9 = vmul.f32 1.1111112, %v1516_v27  ;;  %v1520_v8 = vmul.f32 %v2860_v37, %v3614_v46 }
 0x419   :  { %v2862_v49 = vpop.eup %2861  ;;  %v1568_v14 = vmul.f32 1.1111112, %v1519_v62 }
 0x41a   :  { %2397 = vmatmul.mubr.msk.f32.gmra.mrb[58].mxu0 %vm1549_vm14, %v1565_v9  ;;  %v1518_v30 = vmul.f32 %v2862_v49, %v3623_v54  ;;  %v1569_v58 = vmul.f32 1.1111112, %v1520_v8 }
 0x41b   :  { %2399 = vmatprep.mubr.msk.f32.mxu0 %vm1550_vm15, %v1566_v10 }
 0x41c   :  { %v1567_v60 = vmul.f32 1.1111112, %v1518_v30 }
 0x41e   :  { %2400 = vmatmul.mubr.msk.f32.gmra.mrb[60].mxu0 %vm1551_vm1, %v1567_v60 }
 0x41f   :  { %2402 = vmatprep.mubr.msk.f32.mxu0 %vm1552_vm2, %v1568_v14 }
 0x422   :  { %2403 = vmatmul.mubr.msk.f32.gmra.mrb[62].mxu0 %vm1553_vm3, %v1569_v58 }
 0x481   :  { %v2271_v45 = vpop.f32.mrb[32].mxu0 }
 0x482   :  { %1073 = vst.msk [vmem:[%s3897_s4 + $0x8] sm:$0xff] %vm60_vm0, %v2271_v45  ;;  %v993_v54 = vpop.f32.mrb[33].mxu0 }
 0x483   :  { %1072 = vst.msk [vmem:[%s3897_s4] sm:$0xff] %vm60_vm0, %v993_v54 }
 0x489   :  { %v2274_v46 = vpop.f32.mrb[34].mxu0 }
 0x48a   :  { %1075 = vst.msk [vmem:[%s3897_s4 + $0x18] sm:$0xff] %vm60_vm0, %v2274_v46  ;;  %v1003_v41 = vpop.f32.mrb[35].mxu0 }
 0x48b   :  { %1074 = vst.msk [vmem:[%s3897_s4 + $0x10] sm:$0xff] %vm60_vm0, %v1003_v41 }
 0x4b4   :  { %v2277_v2 = vpop.f32.mrb[36].mxu0 }
 0x4b5   :  { %1077 = vst.msk [vmem:[%s3897_s4 + $0x28] sm:$0xff] %vm60_vm0, %v2277_v2  ;;  %v1013_v39 = vpop.f32.mrb[37].mxu0 }
 0x4b6   :  { %1076 = vst.msk [vmem:[%s3897_s4 + $0x20] sm:$0xff] %vm60_vm0, %v1013_v39 }
 0x4b8   :  { %v2280_v12 = vpop.f32.mrb[38].mxu0 }
 0x4b9   :  { %1079 = vst.msk [vmem:[%s3897_s4 + $0x38] sm:$0xff] %vm60_vm0, %v2280_v12  ;;  %v1023_v42 = vpop.f32.mrb[39].mxu0 }
 0x4ba   :  { %1078 = vst.msk [vmem:[%s3897_s4 + $0x30] sm:$0xff] %vm60_vm0, %v1023_v42 }
 0x4c9   :  { %v2283_v20 = vpop.f32.mrb[40].mxu0 }
 0x4ca   :  { %1081 = vst.msk [vmem:[%s3897_s4 + $0x48] sm:$0xff] %vm60_vm0, %v2283_v20  ;;  %v1033_v31 = vpop.f32.mrb[41].mxu0 }
 0x4cb   :  { %1080 = vst.msk [vmem:[%s3897_s4 + $0x40] sm:$0xff] %vm60_vm0, %v1033_v31 }
 0x4cd   :  { %v2286_v38 = vpop.f32.mrb[42].mxu0 }
 0x4ce   :  { %1083 = vst.msk [vmem:[%s3897_s4 + $0x58] sm:$0xff] %vm60_vm0, %v2286_v38  ;;  %v1043_v35 = vpop.f32.mrb[43].mxu0 }
 0x4cf   :  { %1082 = vst.msk [vmem:[%s3897_s4 + $0x50] sm:$0xff] %vm60_vm0, %v1043_v35 }
 0x4d1   :  { %v2289_v34 = vpop.f32.mrb[44].mxu0 }
 0x4d2   :  { %1085 = vst.msk [vmem:[%s3897_s4 + $0x68] sm:$0xff] %vm60_vm0, %v2289_v34  ;;  %v1053_v47 = vpop.f32.mrb[45].mxu0 }
 0x4d3   :  { %1084 = vst.msk [vmem:[%s3897_s4 + $0x60] sm:$0xff] %vm60_vm0, %v1053_v47 }
 0x4d5   :  { %v2292_v43 = vpop.f32.mrb[46].mxu0 }
 0x4d6   :  { %1087 = vst.msk [vmem:[%s3897_s4 + $0x78] sm:$0xff] %vm60_vm0, %v2292_v43  ;;  %v1063_v11 = vpop.f32.mrb[47].mxu0 }
 0x4d7   :  { %1086 = vst.msk [vmem:[%s3897_s4 + $0x70] sm:$0xff] %vm60_vm0, %v1063_v11 }
 0x4d9   :  { %v2383_v13 = vpop.f32.mrb[48].mxu0 }
 0x4da   :  { %1946 = vst.msk [vmem:[%s3897_s4 + $0x88] sm:$0xff] %vm60_vm0, %v2383_v13  ;;  %v1700_v44 = vpop.f32.mrb[49].mxu0 }
 0x4db   :  { %1945 = vst.msk [vmem:[%s3897_s4 + $0x80] sm:$0xff] %vm60_vm0, %v1700_v44 }
 0x4dd   :  { %v2386_v57 = vpop.f32.mrb[50].mxu0 }
 0x4de   :  { %1948 = vst.msk [vmem:[%s3897_s4 + $0x98] sm:$0xff] %vm60_vm0, %v2386_v57  ;;  %v1710_v1 = vpop.f32.mrb[51].mxu0 }
 0x4df   :  { %1947 = vst.msk [vmem:[%s3897_s4 + $0x90] sm:$0xff] %vm60_vm0, %v1710_v1 }
 0x4e1   :  { %v2389_v56 = vpop.f32.mrb[52].mxu0 }
 0x4e2   :  { %1950 = vst.msk [vmem:[%s3897_s4 + $0xa8] sm:$0xff] %vm60_vm0, %v2389_v56  ;;  %v1720_v6 = vpop.f32.mrb[53].mxu0 }
 0x4e3   :  { %1949 = vst.msk [vmem:[%s3897_s4 + $0xa0] sm:$0xff] %vm60_vm0, %v1720_v6 }
 0x4e5   :  { %v2392_v23 = vpop.f32.mrb[54].mxu0 }
 0x4e6   :  { %1952 = vst.msk [vmem:[%s3897_s4 + $0xb8] sm:$0xff] %vm60_vm0, %v2392_v23  ;;  %v1730_v52 = vpop.f32.mrb[55].mxu0 }
 0x4e7   :  { %1951 = vst.msk [vmem:[%s3897_s4 + $0xb0] sm:$0xff] %vm60_vm0, %v1730_v52 }
 0x4e9   :  { %v2395_v19 = vpop.f32.mrb[56].mxu0 }
 0x4ea   :  { %1954 = vst.msk [vmem:[%s3897_s4 + $0xc8] sm:$0xff] %vm60_vm0, %v2395_v19  ;;  %v1740_v18 = vpop.f32.mrb[57].mxu0 }
 0x4eb   :  { %1953 = vst.msk [vmem:[%s3897_s4 + $0xc0] sm:$0xff] %vm60_vm0, %v1740_v18 }
 0x4ed   :  { %v2398_v61 = vpop.f32.mrb[58].mxu0 }
 0x4ee   :  { %1956 = vst.msk [vmem:[%s3897_s4 + $0xd8] sm:$0xff] %vm60_vm0, %v2398_v61  ;;  %v1750_v63 = vpop.f32.mrb[59].mxu0 }
 0x4ef   :  { %1955 = vst.msk [vmem:[%s3897_s4 + $0xd0] sm:$0xff] %vm60_vm0, %v1750_v63 }
 0x4f1   :  { %v2401_v7 = vpop.f32.mrb[60].mxu0 }
 0x4f2   :  { %1958 = vst.msk [vmem:[%s3897_s4 + $0xe8] sm:$0xff] %vm60_vm0, %v2401_v7  ;;  %v1760_v55 = vpop.f32.mrb[61].mxu0 }
 0x4f3   :  { %1957 = vst.msk [vmem:[%s3897_s4 + $0xe0] sm:$0xff] %vm60_vm0, %v1760_v55 }
 0x4f5   :  { %v2404_v22 = vpop.f32.mrb[62].mxu0 }
 0x4f6   :  { %1960 = vst.msk [vmem:[%s3897_s4 + $0xf8] sm:$0xff] %vm60_vm0, %v2404_v22  ;;  %v1770_v59 = vpop.f32.mrb[63].mxu0 }
 0x4f7   :  { %1959 = vst.msk [vmem:[%s3897_s4 + $0xf0] sm:$0xff] %vm60_vm0, %v1770_v59 }

</bundles_post_ra>
